<compile_context>
chip_gen: v7x
topology: tpu7x:2x2x1
jax: 0.10.0
libtpu: 0.0.40
codegen_flags: <defaults>
</compile_context>

<pallas_src>
import functools

import jax
import jax.numpy as jnp
from jax.experimental import pallas as pl
from jax.experimental.pallas import tpu as pltpu


def _softplus(x):
    # Numerically stable softplus == log1p(exp(x)); saturates to x for large x.
    return jnp.maximum(x, 0.0) + jnp.log1p(jnp.exp(-jnp.abs(x)))


def _round_up(x, m):
    return pl.cdiv(x, m) * m


def _bbb_tconv1d_kernel(x_ref, wmu_ref, wrho_ref, weps_ref,
                        bmu_ref, brho_ref, beps_ref, o_ref,
                        w_scr, b_scr, *, kernel_size, dot_dtype):
    n = pl.program_id(1)

    # --- sample weight/bias once per C_out tile (batch index 0) --------------
    @pl.when(n == 0)
    def _():
        w_sigma = _softplus(wrho_ref[...])
        w_scr[...] = (wmu_ref[...] + weps_ref[...] * w_sigma).astype(dot_dtype)
        b_scr[...] = bmu_ref[...] + beps_ref[...] * _softplus(brho_ref[...])

    l_out = o_ref.shape[1]
    tn = o_ref.shape[2]
    x_full = x_ref[0]                                            # (Lx, Ci_p)

    # --- stride-1 conv as K shifted matmuls (MXU, f32 accumulate) ------------
    acc = jnp.zeros((l_out, tn), jnp.float32)
    for k in range(kernel_size):                                 # K small & static
        xk = x_full[k:k + l_out, :].astype(dot_dtype)            # (Lo, Ci_p)
        acc = acc + jnp.dot(xk, w_scr[k],
                            preferred_element_type=jnp.float32)  # (Lo, TN)

    o_ref[0] = (acc + b_scr[...]).astype(o_ref.dtype)            # one lane-dense store


def bbb_trans_conv1d_forward(x, W_mu, W_rho, W_eps, bias_mu, bias_rho, bias_eps,
                             *, stride=1, padding=0,
                             dot_dtype=jnp.bfloat16, c_out_tile=128):
    """conv_transpose1d(x, W_mu + W_eps*softplus(W_rho), bias, stride, padding).

    x:      (N, C_in, L)        float32
    W_*:    (C_in, C_out, K)    float32   (PyTorch conv_transpose1d layout)
    bias_*: (C_out,)            float32
    returns (N, C_out, L_out),  L_out = (L-1)*stride - 2*padding + K
    """
    N, C_in, L = x.shape
    C_in_w, C_out, K = W_mu.shape
    assert C_in_w == C_in
    if not (0 <= padding <= K - 1):
        # TODO(synk): padding > K-1 requires output cropping instead of input padding.
        raise NotImplementedError("padding must be in [0, kernel_size-1]")

    L_out = (L - 1) * stride - 2 * padding + K

    # ---- layout prep (wrapper-side, pure data movement) ---------------------
    Ci_p = _round_up(C_in, 128)          # lane-dense contraction dim
    Co_p = _round_up(C_out, c_out_tile)  # lane-dense output dim
    Lo_p = _round_up(L_out, 8)           # sublane-dense output length
    Lx = _round_up(Lo_p + K - 1, 8)      # input window the kernel reads

    # channels-last, zero-dilated (stride), edge-padded input
    x_t = jnp.transpose(x, (0, 2, 1))                            # (N, L, C_in)
    L_dil = (L - 1) * stride + 1
    pad_edge = K - 1 - padding
    x_pad = jnp.zeros((N, Lx, Ci_p), x.dtype)
    x_pad = x_pad.at[:, pad_edge:pad_edge + L_dil:stride, :C_in].set(x_t)

    # weights: (C_in, C_out, K) -> (K, C_in, C_out) with tap axis flipped, then
    # zero-padded.  Elementwise sampling commutes with this relayout, and the
    # padded entries sample to exactly 0 (mu=0, eps=0).
    def prep_w(w):
        wt = jnp.transpose(w, (2, 0, 1))[::-1]                   # (K, C_in, C_out)
        return jnp.zeros((K, Ci_p, Co_p), w.dtype).at[:, :C_in, :C_out].set(wt)

    def prep_b(b):
        return jnp.zeros((1, Co_p), b.dtype).at[0, :C_out].set(b)

    Wm, Wr, We = prep_w(W_mu), prep_w(W_rho), prep_w(W_eps)
    bm, br, be = prep_b(bias_mu), prep_b(bias_rho), prep_b(bias_eps)

    TN = c_out_tile
    # C_out-tile axis outer ("parallel", megacore); batch axis inner
    # ("arbitrary") so the sampled weight scratch is reused across batches.
    grid = (Co_p // TN, N)

    kernel = functools.partial(_bbb_tconv1d_kernel,
                               kernel_size=K, dot_dtype=dot_dtype)

    # TODO(synk): for very long sequences, additionally tile the output-length
    # axis with halo'd x windows instead of keeping the full length per batch.
    out_padded = pl.pallas_call(
        kernel,
        out_shape=jax.ShapeDtypeStruct((N, Lo_p, Co_p), x.dtype),
        grid=grid,
        in_specs=[
            pl.BlockSpec((1, Lx, Ci_p), lambda j, n: (n, 0, 0)),   # x (per batch)
            pl.BlockSpec((K, Ci_p, TN), lambda j, n: (0, 0, j)),   # W_mu
            pl.BlockSpec((K, Ci_p, TN), lambda j, n: (0, 0, j)),   # W_rho
            pl.BlockSpec((K, Ci_p, TN), lambda j, n: (0, 0, j)),   # W_eps
            pl.BlockSpec((1, TN), lambda j, n: (0, j)),            # bias_mu
            pl.BlockSpec((1, TN), lambda j, n: (0, j)),            # bias_rho
            pl.BlockSpec((1, TN), lambda j, n: (0, j)),            # bias_eps
        ],
        out_specs=pl.BlockSpec((1, Lo_p, TN), lambda j, n: (n, 0, j)),
        scratch_shapes=[
            pltpu.VMEM((K, Ci_p, TN), dot_dtype),   # sampled weight (bf16, MXU-ready)
            pltpu.VMEM((1, TN), jnp.float32),       # sampled bias
        ],
        compiler_params=pltpu.CompilerParams(
            dimension_semantics=("parallel", "arbitrary"),
        ),
    )(x_pad, Wm, Wr, We, bm, br, be)

    # crop padding, back to PyTorch layout (N, C_out, L_out)
    return jnp.transpose(out_padded[:, :L_out, :C_out], (0, 2, 1))


if __name__ == "__main__":
    # Small shapes consistent with BBBTransConv1d.
    N, C_in, C_out = 2, 8, 16
    K, stride, padding = 3, 2, 1
    L = 16

    key = jax.random.PRNGKey(0)
    k_x, k_wmu, k_wrho, k_bmu, k_brho, k_weps, k_beps = jax.random.split(key, 7)

    x = jax.random.normal(k_x, (N, C_in, L), dtype=jnp.float32)

    # reset_parameters(): posterior_mu_initial=(0, 0.1), posterior_rho_initial=(-3, 0.1)
    W_mu = 0.0 + 0.1 * jax.random.normal(k_wmu, (C_in, C_out, K), jnp.float32)
    W_rho = -3.0 + 0.1 * jax.random.normal(k_wrho, (C_in, C_out, K), jnp.float32)
    bias_mu = 0.0 + 0.1 * jax.random.normal(k_bmu, (C_out,), jnp.float32)
    bias_rho = -3.0 + 0.1 * jax.random.normal(k_brho, (C_out,), jnp.float32)

    # Reparameterization noise (torch.empty(...).normal_(0, 1)); deterministic here.
    W_eps = jax.random.normal(k_weps, (C_in, C_out, K), jnp.float32)
    bias_eps = jax.random.normal(k_beps, (C_out,), jnp.float32)

    out = bbb_trans_conv1d_forward(x, W_mu, W_rho, W_eps,
                                   bias_mu, bias_rho, bias_eps,
                                   stride=stride, padding=padding)
    out = jax.block_until_ready(out)

    # ---- pure-JAX reference for F.conv_transpose1d semantics ----------------
    w_sigma = jnp.log1p(jnp.exp(W_rho))
    weight = W_mu + W_eps * w_sigma                   # (C_in, C_out, K)
    b_sigma = jnp.log1p(jnp.exp(bias_rho))
    bias = bias_mu + bias_eps * b_sigma               # (C_out,)

    L_out = (L - 1) * stride - 2 * padding + K
    ext = jnp.zeros((N, C_out, (L - 1) * stride + K), jnp.float32)
    for k in range(K):
        contrib = jnp.einsum('ncl,cd->ndl', x, weight[:, :, k])
        ext = ext.at[:, :, k:k + (L - 1) * stride + 1:stride].add(contrib)
    ref = ext[:, :, padding:padding + L_out] + bias[None, :, None]

    assert out.shape == (N, C_out, L_out), out.shape
    # bf16 MXU operands with f32 accumulation -> loosened tolerance vs f32 ref.
    assert jnp.allclose(out, ref, atol=2e-2, rtol=2e-2), \
        float(jnp.max(jnp.abs(out - ref)))

    # TODO(synk): kl_loss() (KL divergence vs the prior) is part of the
    # ModuleWrapper return tuple but is not exercised by this forward kernel.
    print("KERNEL_OK")
</pallas_src>

<mosaic_0001>
module attributes {stable_mosaic.version = 11 : i64} {
  func.func @_bbb_tconv1d_kernel(%arg0: i32, %arg1: i32, %arg2: memref<1x40x128xf32, #tpu.memory_space<vmem>>, %arg3: memref<3x128x128xf32, #tpu.memory_space<vmem>>, %arg4: memref<3x128x128xf32, #tpu.memory_space<vmem>>, %arg5: memref<3x128x128xf32, #tpu.memory_space<vmem>>, %arg6: memref<1x128xf32, #tpu.memory_space<vmem>>, %arg7: memref<1x128xf32, #tpu.memory_space<vmem>>, %arg8: memref<1x128xf32, #tpu.memory_space<vmem>>, %arg9: memref<1x32x128xf32, #tpu.memory_space<vmem>>, %arg10: memref<3x128x128xbf16, #tpu.memory_space<vmem>>, %arg11: memref<1x128xf32, #tpu.memory_space<vmem>>) attributes {dimension_semantics = [#tpu.dimension_semantics<parallel>, #tpu.dimension_semantics<arbitrary>], iteration_bounds = array<i64: 1, 2>, scalar_prefetch = 0 : i64, scratch_operands = 2 : i64, tpu.core_type = #tpu.core_type<tc>, window_params = [{transform_indices = @transform_0, window_bounds = array<i64: 1, 40, 128>}, {transform_indices = @transform_1, window_bounds = array<i64: 3, 128, 128>}, {transform_indices = @transform_2, window_bounds = array<i64: 3, 128, 128>}, {transform_indices = @transform_3, window_bounds = array<i64: 3, 128, 128>}, {transform_indices = @transform_4, window_bounds = array<i64: 1, 128>}, {transform_indices = @transform_5, window_bounds = array<i64: 1, 128>}, {transform_indices = @transform_6, window_bounds = array<i64: 1, 128>}, {transform_indices = @transform_7, window_bounds = array<i64: 1, 32, 128>}]} {
    %c0_i32 = arith.constant 0 : i32
    %0 = arith.cmpi eq, %arg1, %c0_i32 : i32
    %1 = arith.extui %0 : i1 to i32
    %c0_i32_0 = arith.constant 0 : i32
    %2 = arith.cmpi ne, %1, %c0_i32_0 : i32
    scf.if %2 {
      %c0_18 = arith.constant 0 : index
      %c0_19 = arith.constant 0 : index
      %c0_20 = arith.constant 0 : index
      %30 = vector.load %arg4[%c0_18, %c0_19, %c0_20] : memref<3x128x128xf32, #tpu.memory_space<vmem>>, vector<3x128x128xf32>
      %cst_21 = arith.constant 0.000000e+00 : f32
      %31 = vector.broadcast %cst_21 : f32 to vector<3x128x128xf32>
      %32 = arith.maximumf %30, %31 : vector<3x128x128xf32>
      %33 = math.absf %30 : vector<3x128x128xf32>
      %cst_22 = arith.constant 0.000000e+00 : f32
      %34 = vector.broadcast %cst_22 : f32 to vector<3x128x128xf32>
      %35 = arith.subf %34, %33 : vector<3x128x128xf32>
      %36 = math.exp %35 : vector<3x128x128xf32>
      %37 = math.log1p %36 : vector<3x128x128xf32>
      %38 = arith.addf %32, %37 : vector<3x128x128xf32>
      %c0_23 = arith.constant 0 : index
      %c0_24 = arith.constant 0 : index
      %c0_25 = arith.constant 0 : index
      %39 = vector.load %arg3[%c0_23, %c0_24, %c0_25] : memref<3x128x128xf32, #tpu.memory_space<vmem>>, vector<3x128x128xf32>
      %c0_26 = arith.constant 0 : index
      %c0_27 = arith.constant 0 : index
      %c0_28 = arith.constant 0 : index
      %40 = vector.load %arg5[%c0_26, %c0_27, %c0_28] : memref<3x128x128xf32, #tpu.memory_space<vmem>>, vector<3x128x128xf32>
      %41 = arith.mulf %40, %38 : vector<3x128x128xf32>
      %42 = arith.addf %39, %41 : vector<3x128x128xf32>
      %43 = arith.truncf %42 : vector<3x128x128xf32> to vector<3x128x128xbf16>
      %c0_29 = arith.constant 0 : index
      %c0_30 = arith.constant 0 : index
      %c0_31 = arith.constant 0 : index
      %44 = vector.load %arg10[%c0_29, %c0_30, %c0_31] : memref<3x128x128xbf16, #tpu.memory_space<vmem>>, vector<3x128x128xbf16>
      tpu.vector_store %arg10[%c0_29, %c0_30, %c0_31], %43 {strides = array<i32>} : memref<3x128x128xbf16, #tpu.memory_space<vmem>>, vector<3x128x128xbf16>,
      %c0_32 = arith.constant 0 : index
      %c0_33 = arith.constant 0 : index
      %45 = vector.load %arg6[%c0_32, %c0_33] : memref<1x128xf32, #tpu.memory_space<vmem>>, vector<1x128xf32>
      %c0_34 = arith.constant 0 : index
      %c0_35 = arith.constant 0 : index
      %46 = vector.load %arg8[%c0_34, %c0_35] : memref<1x128xf32, #tpu.memory_space<vmem>>, vector<1x128xf32>
      %c0_36 = arith.constant 0 : index
      %c0_37 = arith.constant 0 : index
      %47 = vector.load %arg7[%c0_36, %c0_37] : memref<1x128xf32, #tpu.memory_space<vmem>>, vector<1x128xf32>
      %cst_38 = arith.constant 0.000000e+00 : f32
      %48 = vector.broadcast %cst_38 : f32 to vector<1x128xf32>
      %49 = arith.maximumf %47, %48 : vector<1x128xf32>
      %50 = math.absf %47 : vector<1x128xf32>
      %cst_39 = arith.constant 0.000000e+00 : f32
      %51 = vector.broadcast %cst_39 : f32 to vector<1x128xf32>
      %52 = arith.subf %51, %50 : vector<1x128xf32>
      %53 = math.exp %52 : vector<1x128xf32>
      %54 = math.log1p %53 : vector<1x128xf32>
      %55 = arith.addf %49, %54 : vector<1x128xf32>
      %56 = arith.mulf %46, %55 : vector<1x128xf32>
      %57 = arith.addf %45, %56 : vector<1x128xf32>
      %c0_40 = arith.constant 0 : index
      %c0_41 = arith.constant 0 : index
      %58 = vector.load %arg11[%c0_40, %c0_41] : memref<1x128xf32, #tpu.memory_space<vmem>>, vector<1x128xf32>
      tpu.vector_store %arg11[%c0_40, %c0_41], %57 {strides = array<i32>} : memref<1x128xf32, #tpu.memory_space<vmem>>, vector<1x128xf32>,
    } else {
    }
    %c0 = arith.constant 0 : index
    %c0_1 = arith.constant 0 : index
    %c0_2 = arith.constant 0 : index
    %3 = vector.load %arg2[%c0, %c0_1, %c0_2] : memref<1x40x128xf32, #tpu.memory_space<vmem>>, vector<1x40x128xf32>
    %4 = vector.shape_cast %3 : vector<1x40x128xf32> to vector<40x128xf32>
    %cst = arith.constant 0.000000e+00 : f32
    %5 = vector.broadcast %cst : f32 to vector<32x128xf32>
    %6 = vector.extract_strided_slice %4 {offsets = [0, 0], sizes = [32, 128], strides = [1, 1]} : vector<40x128xf32> to vector<32x128xf32>
    %7 = arith.truncf %6 : vector<32x128xf32> to vector<32x128xbf16>
    %c0_3 = arith.constant 0 : index
    %c0_4 = arith.constant 0 : index
    %c0_5 = arith.constant 0 : index
    %8 = vector.load %arg10[%c0_3, %c0_4, %c0_5] : memref<3x128x128xbf16, #tpu.memory_space<vmem>>, vector<1x128x128xbf16>
    %9 = vector.shape_cast %8 : vector<1x128x128xbf16> to vector<128x128xbf16>
    %cst_6 = arith.constant dense<0.000000e+00> : vector<32x128xf32>
    %10 = tpu.matmul %7, %9, %cst_6 {dimension_numbers = #tpu.dot_dimension_numbers<[1], [0], [0], [1], [0, 0, 1, 1], [], []>} : vector<32x128xbf16>, vector<128x128xbf16>, vector<32x128xf32> -> vector<32x128xf32>
    %11 = arith.addf %5, %10 : vector<32x128xf32>
    %12 = vector.extract_strided_slice %4 {offsets = [1, 0], sizes = [32, 128], strides = [1, 1]} : vector<40x128xf32> to vector<32x128xf32>
    %13 = arith.truncf %12 : vector<32x128xf32> to vector<32x128xbf16>
    %c1 = arith.constant 1 : index
    %c0_7 = arith.constant 0 : index
    %c0_8 = arith.constant 0 : index
    %14 = vector.load %arg10[%c1, %c0_7, %c0_8] : memref<3x128x128xbf16, #tpu.memory_space<vmem>>, vector<1x128x128xbf16>
    %15 = vector.shape_cast %14 : vector<1x128x128xbf16> to vector<128x128xbf16>
    %cst_9 = arith.constant dense<0.000000e+00> : vector<32x128xf32>
    %16 = tpu.matmul %13, %15, %cst_9 {dimension_numbers = #tpu.dot_dimension_numbers<[1], [0], [0], [1], [0, 0, 1, 1], [], []>} : vector<32x128xbf16>, vector<128x128xbf16>, vector<32x128xf32> -> vector<32x128xf32>
    %17 = arith.addf %11, %16 : vector<32x128xf32>
    %18 = vector.extract_strided_slice %4 {offsets = [2, 0], sizes = [32, 128], strides = [1, 1]} : vector<40x128xf32> to vector<32x128xf32>
    %19 = arith.truncf %18 : vector<32x128xf32> to vector<32x128xbf16>
    %c2 = arith.constant 2 : index
    %c0_10 = arith.constant 0 : index
    %c0_11 = arith.constant 0 : index
    %20 = vector.load %arg10[%c2, %c0_10, %c0_11] : memref<3x128x128xbf16, #tpu.memory_space<vmem>>, vector<1x128x128xbf16>
    %21 = vector.shape_cast %20 : vector<1x128x128xbf16> to vector<128x128xbf16>
    %cst_12 = arith.constant dense<0.000000e+00> : vector<32x128xf32>
    %22 = tpu.matmul %19, %21, %cst_12 {dimension_numbers = #tpu.dot_dimension_numbers<[1], [0], [0], [1], [0, 0, 1, 1], [], []>} : vector<32x128xbf16>, vector<128x128xbf16>, vector<32x128xf32> -> vector<32x128xf32>
    %23 = arith.addf %17, %22 : vector<32x128xf32>
    %c0_13 = arith.constant 0 : index
    %c0_14 = arith.constant 0 : index
    %24 = vector.load %arg11[%c0_13, %c0_14] : memref<1x128xf32, #tpu.memory_space<vmem>>, vector<1x128xf32>
    %25 = vector.broadcast %24 : vector<1x128xf32> to vector<32x128xf32>
    %26 = arith.addf %23, %25 : vector<32x128xf32>
    %c0_15 = arith.constant 0 : index
    %c0_16 = arith.constant 0 : index
    %c0_17 = arith.constant 0 : index
    %27 = vector.load %arg9[%c0_15, %c0_16, %c0_17] : memref<1x32x128xf32, #tpu.memory_space<vmem>>, vector<1x32x128xf32>
    %28 = vector.shape_cast %27 : vector<1x32x128xf32> to vector<32x128xf32>
    %29 = vector.shape_cast %26 : vector<32x128xf32> to vector<1x32x128xf32>
    tpu.vector_store %arg9[%c0_15, %c0_16, %c0_17], %29 {strides = array<i32>} : memref<1x32x128xf32, #tpu.memory_space<vmem>>, vector<1x32x128xf32>,
    return
  }
  func.func @transform_0(%arg0: i32, %arg1: i32) -> (i32, i32, i32) {
    %c0_i32 = arith.constant 0 : i32
    %c0_i32_0 = arith.constant 0 : i32
    %c0_i32_1 = arith.constant 0 : i32
    return %arg1, %c0_i32, %c0_i32_0 : i32, i32, i32
  }
  func.func @transform_1(%arg0: i32, %arg1: i32) -> (i32, i32, i32) {
    %c0_i32 = arith.constant 0 : i32
    %c0_i32_0 = arith.constant 0 : i32
    %c0_i32_1 = arith.constant 0 : i32
    return %c0_i32, %c0_i32_0, %arg0 : i32, i32, i32
  }
  func.func @transform_2(%arg0: i32, %arg1: i32) -> (i32, i32, i32) {
    %c0_i32 = arith.constant 0 : i32
    %c0_i32_0 = arith.constant 0 : i32
    %c0_i32_1 = arith.constant 0 : i32
    return %c0_i32, %c0_i32_0, %arg0 : i32, i32, i32
  }
  func.func @transform_3(%arg0: i32, %arg1: i32) -> (i32, i32, i32) {
    %c0_i32 = arith.constant 0 : i32
    %c0_i32_0 = arith.constant 0 : i32
    %c0_i32_1 = arith.constant 0 : i32
    return %c0_i32, %c0_i32_0, %arg0 : i32, i32, i32
  }
  func.func @transform_4(%arg0: i32, %arg1: i32) -> (i32, i32) {
    %c0_i32 = arith.constant 0 : i32
    %c0_i32_0 = arith.constant 0 : i32
    return %c0_i32, %arg0 : i32, i32
  }
  func.func @transform_5(%arg0: i32, %arg1: i32) -> (i32, i32) {
    %c0_i32 = arith.constant 0 : i32
    %c0_i32_0 = arith.constant 0 : i32
    return %c0_i32, %arg0 : i32, i32
  }
  func.func @transform_6(%arg0: i32, %arg1: i32) -> (i32, i32) {
    %c0_i32 = arith.constant 0 : i32
    %c0_i32_0 = arith.constant 0 : i32
    return %c0_i32, %arg0 : i32, i32
  }
  func.func @transform_7(%arg0: i32, %arg1: i32) -> (i32, i32, i32) {
    %c0_i32 = arith.constant 0 : i32
    %c0_i32_0 = arith.constant 0 : i32
    return %arg1, %c0_i32, %arg0 : i32, i32, i32
  }
}

</mosaic_0001>

<bundles_post_ra>
// kernel: tpu_custom_call.1
= control target key start
LH: loop header
LB: loop body
LE: loop exit
PB: predicated region body
PF: predicated region fallthrough
CT: control target
= control target key end

     0   :  { %s3508_s0 = inlined_call_operand.hbm [shape: f32[2,40,128], index: 0, kind: input, shape index: {}]   ;;  %s3509_s1 = inlined_call_operand.hbm [shape: f32[3,128,128], index: 1, kind: input, shape index: {}]   ;;  %s3510_s2 = inlined_call_operand.hbm [shape: f32[3,128,128], index: 2, kind: input, shape index: {}]   ;;  %s3511_s3 = inlined_call_operand.hbm [shape: f32[3,128,128], index: 3, kind: input, shape index: {}]   ;;  %s3512_s4 = inlined_call_operand.vmem [shape: f32[1,128], index: 4, kind: input, shape index: {}]   ;;  %s3513_s5 = inlined_call_operand.vmem [shape: f32[1,128], index: 5, kind: input, shape index: {}]   ;;  %s3514_s6 = inlined_call_operand.vmem [shape: f32[1,128], index: 6, kind: input, shape index: {}]   ;;  %s3515_s7 = inlined_call_operand.hbm [shape: f32[2,32,128], index: 7, kind: output, shape index: {}]  }
   0x1   :  { %3524 = sst [smem:[#allocation19_spill]] %s3512_s4 }
   0x2   :  { %3525 = sst [smem:[#allocation20_spill]] %s3515_s7 }
   0x3   :  { %12 = vsyncpa [#allocation5], 0 }
   0x4   :  { %14 = vsyncpa [#allocation5 + $0x1], 0 }
   0x5   :  { %15 = vsyncpa [#allocation8], 0 }
   0x6   :  { %16 = vsyncpa [#allocation11], 0 }
   0x7   :  { %17 = vsyncpa [#allocation6], 0 }
   0x8   :  { %19 = vsyncpa [#allocation6 + $0x1], 0  ;;  %s2528_s24 = smov 0   ;;  %s2530_s25 = smov 0  }
   0x9   :  { %s2532_s26 = smov 0   ;;  %s2534_s27 = smov 0  }
   0xa   :  { %s2536_s28 = smov 0   ;;  %s2538_s29 = smov 0  }
   0xb LB: > { %3526 = sst [smem:[#allocation17_spill]] %s2457_s24  ;;  %s1855_s30 = sadd.s32 4294967295, %s2477_s29   ;;  %s2477_s29 = sphi %s2538_s29, %s25_s29   ;;  %s2473_s28 = sphi %s2536_s28, %s3644_s28   ;;  %s2469_s27 = sphi %s2534_s27, %s3643_s27   ;;  %s2465_s26 = sphi %s2532_s26, %s3642_s26   ;;  %s2461_s25 = sphi %s2530_s25, %s3641_s25   ;;  %s2457_s24 = sphi %s2528_s24, %s3640_s24  }
   0xc   : > { %s1856_s8 = sadd.s32 4294967294, %s2477_s29   ;;  %p57_p0 = scmp.ne.s32.totalorder %s2461_s25, %s2457_s24 }
   0xd   : > { %p2562_p1 = scmp.eq.s32.totalorder %s1855_s30, 0  ;;  %p2566_p2 = scmp.eq.s32.totalorder %s1855_s30, 1 }
   0xe   : > { %p245_p3 = scmp.eq.s32.totalorder %s1856_s8, 1  ;;  %p1857_p5 = scmp.ge.s32.totalorder %s2477_s29, 1 }
   0xf   : > { %s3527_s9 = scalar_select %p2562_p1, 1, 0 }
  0x10   : > { %s3528_s10 = scalar_select %p2566_p2, 1, 0 }
  0x11   : > { %p2572_p4 = por %p2562_p1, %p57_p0  ;;  %p2577_p6 = por %p245_p3, %p57_p0 }
  0x12   : > { %p252_p7 = scmp.lt.s32.totalorder %s2477_s29, 3  ;;  %s2479_s14 = smov [#allocation7]  }
  0x13   : > { %s3529_s11 = scalar_select %p2572_p4, 1, 0 }
  0x14   : > { %s3530_s12 = scalar_select %p2577_p6, 1, 0 }
  0x15   : > { %p2582_p8 = pnand %p1857_p5, %p252_p7  ;;  %s266_s15 = sshll.u32 %s2479_s14, 4  ;;  %s2586_s15 = int_to_ptr.vmem [resolvable:$true] %s266_s15 }
  0x16   : > { %3531 = sst [smem:[#allocation18_spill]] %s3530_s12  ;;  %s2480_s17 = smov [#allocation9]  }
  0x17   : > { %s3532_s13 = scalar_select %p2582_p8, 1, 0 }
  0x18   : > { %p1996_p9 = pneg %p2582_p8  ;;  %s281_s18 = sshll.u32 %s2480_s17, 4  ;;  %s2597_s18 = int_to_ptr.vmem [resolvable:$true] %s281_s18 }
  0x19   : > { %s2481_s19 = smov [#allocation10]   ;;  %s2273_s23 = scalar_lea.hbm %s3509_s1, 6144 }
  0x1a   : > { %p2593_p11 = pnand %p1996_p9, %p2562_p1  ;;  %s2599_s20 = sshll.u32 %s2481_s19, 4  ;;  %s297_s20 = int_to_ptr.vmem [resolvable:$true] %s2599_s20 }
  0x1b   : > { %p2274_p12 = scmp.ne.s32.totalorder %s3509_s1, %s2273_s23  ;;  %p2280_p5 = scmp.lt.u32.totalorder %s2273_s23, %s3509_s1 }
  0x1c   : > { %p2609_p13 = pneg %p2593_p11 }
  0x1e   : > { %p2276_p0 = pnand %p2609_p13, %p2274_p12 }
  0x20   : > { %p2277_p3 = pneg %p2276_p0 }
  0x22   : > { %p2282_p7 = pnand %p2280_p5, %p2277_p3 }
  0x24   : > { %2285 = shalt.err (!%p2282_p7)
}
  0x25   : > { %s2286_s21 = scalar_lea.vmem %s2586_s15, 6144  ;;  %p2294_p1 = scmp.lt.s32.totalorder %s2586_s15, %s2586_s15 }
  0x26   : > { %p2287_p9 = scmp.ne.s32.totalorder %s2586_s15, %s2286_s21  ;;  %p2295_p4 = scmp.lt.s32.totalorder %s2286_s21, %s2286_s21 }
  0x28   : > { %p2289_p10 = pnand %p2287_p9, %p2609_p13  ;;  %p2296_p12 = por %p2295_p4, %p2294_p1 }
  0x2a   : > { %p2290_p6 = pneg %p2289_p10 }
  0x2c   : > { %p2297_p0 = pnand %p2296_p12, %p2290_p6 }
  0x2e   : > { %2300 = shalt.err (!%p2297_p0)
}
  0x2f   : > { %s3523_s22 = smov 128   ;;  %s2483_s23 = smov 8  }
  0x30   : > { %1999 = dma.hbm_to_vmem [thread:$0]  (!%p2593_p11), %s3509_s1, 6144, %s2586_s15, [#allocation8], %s3523_s22, %s3523_s22, %s2483_s23  }
  0x31   : > { %s2301_s21 = scalar_lea.hbm %s3510_s2, 6144 }
  0x32   : > { %p2302_p1 = scmp.ne.s32.totalorder %s3510_s2, %s2301_s21  ;;  %p2308_p10 = scmp.lt.u32.totalorder %s2301_s21, %s3510_s2 }
  0x34   : > { %p2304_p4 = pnand %p2302_p1, %p2609_p13 }
  0x36   : > { %p2305_p6 = pneg %p2304_p4 }
  0x38   : > { %p2310_p3 = pnand %p2308_p10, %p2305_p6 }
  0x3a   : > { %2313 = shalt.err (!%p2310_p3)
}
  0x3b   : > { %s2314_s15 = scalar_lea.vmem %s2597_s18, 6144  ;;  %p2322_p12 = scmp.lt.s32.totalorder %s2597_s18, %s2597_s18 }
  0x3c   : > { %p2315_p5 = scmp.ne.s32.totalorder %s2597_s18, %s2314_s15  ;;  %p2323_p0 = scmp.lt.s32.totalorder %s2314_s15, %s2314_s15 }
  0x3e   : > { %p2317_p7 = pnand %p2315_p5, %p2609_p13  ;;  %p2324_p1 = por %p2323_p0, %p2322_p12 }
  0x40   : > { %p2318_p9 = pneg %p2317_p7 }
  0x42   : > { %p2325_p4 = pnand %p2324_p1, %p2318_p9 }
  0x44   : > { %2328 = shalt.err (!%p2325_p4)
}
  0x45   : > { %2002 = dma.hbm_to_vmem [thread:$0]  (!%p2593_p11), %s3510_s2, 6144, %s2597_s18, [#allocation8], %s3523_s22, %s3523_s22, %s2483_s23  }
  0x46   : > { %s2329_s30 = scalar_lea.hbm %s3511_s3, 6144 }
  0x47   : > { %p2330_p6 = scmp.ne.s32.totalorder %s3511_s3, %s2329_s30  ;;  %p2336_p5 = scmp.lt.u32.totalorder %s2329_s30, %s3511_s3 }
  0x49   : > { %p2332_p10 = pnand %p2330_p6, %p2609_p13 }
  0x4b   : > { %p2333_p3 = pneg %p2332_p10 }
  0x4d   : > { %p2338_p7 = pnand %p2336_p5, %p2333_p3 }
  0x4f   : > { %2341 = shalt.err (!%p2338_p7)
}
  0x50   : > { %s2342_s15 = scalar_lea.vmem %s297_s20, 6144  ;;  %p2350_p1 = scmp.lt.s32.totalorder %s297_s20, %s297_s20 }
  0x51   : > { %p2343_p9 = scmp.ne.s32.totalorder %s297_s20, %s2342_s15  ;;  %p2351_p4 = scmp.lt.s32.totalorder %s2342_s15, %s2342_s15 }
  0x53   : > { %p2345_p12 = pnand %p2343_p9, %p2609_p13  ;;  %p2352_p8 = por %p2351_p4, %p2350_p1 }
  0x55   : > { %p2346_p0 = pneg %p2345_p12 }
  0x57   : > { %p2353_p2 = pnand %p2352_p8, %p2346_p0 }
  0x59   : > { %2356 = shalt.err (!%p2353_p2)
}
  0x5a   : > { %2005 = dma.hbm_to_vmem [thread:$0]  (!%p2593_p11), %s3511_s3, 6144, %s297_s20, [#allocation11], %s3523_s22, %s3523_s22, %s2483_s23  }
  0x5b   : > { %s44_s14 = sadd.s32 1, %s2465_s26  ;;  %s34_s16 = sadd.s32 1, %s2473_s28 }
  0x5c   : > { %p51_p2 = scmp.ne.s32.totalorder %s2465_s26, %s2461_s25  ;;  %p35_p8 = scmp.ge.s32.totalorder %s34_s16, 2 }
  0x5d   : > { %p52_p13 = scmp.eq.s32.totalorder %s2477_s29, 0  ;;  %p3535_p6 = scmp.ne.s32.totalorder %s3528_s10, 0 }
  0x5e   : > { %p2017_p3 = scmp.lt.s32.totalorder %s2477_s29, 2  ;;  %s3646_s16 = smov (%p35_p8, %s34_s16), 0 }
  0x5f   : > { %p2688_p10 = por %p3535_p6, %p51_p2  ;;  %p53_p5 = por %p52_p13, %p51_p2 }
  0x60   : > { %s328_s24 = sand.u32 1, %s2465_s26   ;;  %s41_s12 = ssub.s32 %s2473_s28, %s3646_s16 }
  0x61   : > { %p42_p7 = scmp.eq.s32.totalorder %s41_s12, 0  ;;  %s1977_s20 = smul.u32 40, %s328_s24 }
  0x62   : > { %s1978_s30 = smul.u32 640, %s2473_s28  ;;  %p2699_p11 = pnand %p2017_p3, %p53_p5 }
  0x63   : > { %s2704_s10 = scalar_select %p42_p7, %s2465_s26, %s44_s14  }
  0x64   : > { %s2709_s21 = scalar_lea.hbm %s3508_s0, %s1978_s30  ;;  %s332_s15 = scalar_lea.vmem [#allocation4], %s1977_s20 }
  0x65   : > { %s339_s18 = sshll.u32 %s332_s15, 4  ;;  %s2713_s4 = scalar_lea.sflag [#allocation5], %s328_s24  ;;  %s2711_s18 = int_to_ptr.vmem [resolvable:$true] %s339_s18 }
  0x66   : > { %s2357_s12 = scalar_lea.hbm %s2709_s21, 640  ;;  %p2359_p12 = pneg %p2699_p11 }
  0x67   : > { %p2358_p9 = scmp.ne.s32.totalorder %s2709_s21, %s2357_s12  ;;  %s2362_s17 = scalar_lea.hbm %s3508_s0, 1280 }
  0x68   : > { %p2363_p4 = scmp.lt.u32.totalorder %s2709_s21, %s3508_s0  ;;  %p2364_p2 = scmp.lt.u32.totalorder %s2362_s17, %s2357_s12 }
  0x69   : > { %p2360_p0 = pnand %p2359_p12, %p2358_p9  ;;  %p2366_p13 = scmp.lt.u32.totalorder %s2357_s12, %s2709_s21 }
  0x6a   : > { %p2365_p8 = por %p2364_p2, %p2363_p4 }
  0x6b   : > { %p2361_p1 = pneg %p2360_p0 }
  0x6c   : > { %p2367_p6 = por %p2366_p13, %p2365_p8 }
  0x6e   : > { %p2368_p3 = pnand %p2367_p6, %p2361_p1 }
  0x70   : > { %2371 = shalt.err (!%p2368_p3)
}
  0x71   : > { %s2372_s24 = scalar_lea.vmem %s2711_s18, 640  ;;  %s2484_s20 = smov [#allocation4]  }
  0x72   : > { %p2373_p5 = scmp.ne.s32.totalorder %s2711_s18, %s2372_s24  ;;  %s2377_s15 = sshll.u32 %s2484_s20, 4  ;;  %s2378_s15 = int_to_ptr.vmem [resolvable:$false] %s2377_s15 }
  0x73   : > { %s2379_s22 = scalar_lea.vmem %s2378_s15, 1280  ;;  %p2380_p0 = scmp.lt.s32.totalorder %s2711_s18, %s2378_s15 }
  0x74   : > { %p2375_p7 = pnand %p2373_p5, %p2359_p12  ;;  %p2381_p4 = scmp.lt.s32.totalorder %s2379_s22, %s2372_s24 }
  0x76   : > { %p2376_p9 = pneg %p2375_p7  ;;  %p2382_p2 = por %p2381_p4, %p2380_p0 }
  0x78   : > { %p2383_p8 = pnand %p2382_p2, %p2376_p9 }
  0x7a   : > { %2386 = shalt.err (!%p2383_p8)
}
  0x7b   : > { %s3538_s12 = smov 128   ;;  %p3539_p12 = scmp.ne.s32.totalorder %s3532_s13, 0 }
  0x7c   : > { %2009 = dma.hbm_to_vmem [thread:$0]  (!%p2699_p11), %s2709_s21, 640, %s2711_s18, %s2713_s4, %s3538_s12, %s3538_s12, %s2483_s23  }
  0x7d   : > { %351 = sbr.rel (%p3539_p12) target bundleno = 672 (0x2a0), region = 48  ;;  %s2747_s14 = sand.u32 (!%p3539_p12), 1, %s2461_s25  }
  0x7e   : > { %s1979_s30 = smul.u32 (!%p3539_p12), 40, %s2747_s14  ;;  %s354_s17 = scalar_lea.sflag (!%p3539_p12), [#allocation5], %s2747_s14 }
  0x7f   : > { %p3540_p1 = scmp.ne.s32.totalorder (!%p3539_p12), %s3529_s11, 0 }
  0x80   : > { %s2751_s19 = scalar_lea.vmem (!%p3539_p12), [#allocation4], %s1979_s30 }
  0x84   : > { %2440 = dma.done.wait (%p3540_p1), %s354_s17, 640  }
  0x85   : > { %2442 = vsyncadd (%p3540_p1), %s354_s17, 4294966656  ;;  %p3541_p11 = scmp.ne.s32.totalorder %s3527_s9, 0 }
  0x87   : > { %2444 = dma.done.wait (%p3541_p11), [#allocation8], 12288  }
  0x88   : > { %2446 = vsyncadd (%p3541_p11), [#allocation8], 4294955008 }
  0x89   : > { %2448 = dma.done.wait (%p3541_p11), [#allocation11], 6144  }
  0x8a   : > { %2450 = vsyncadd (%p3541_p11), [#allocation11], 4294961152  ;;  %s1870_s13 = sshll.u32 %s2747_s14, 5  ;;  %p1871_p13 = scmp.ne.s32.totalorder %s2469_s27, 0 }
  0x8b   : > { %s2766_s23 = scalar_lea.vmem [#allocation12], %s1870_s13  ;;  %v2769_v0 = vld [vmem:[#allocation9] sm:$0xff] (!%p1871_p13)  ;;  %v2771_v1 = vld [vmem:[#allocation9 + $0x8] sm:$0xff] (!%p1871_p13)  ;;  %v2775_v6 = vld [vmem:[#allocation9 + $0x10] sm:$0xff] (!%p1871_p13)  ;;  %s3634_s24 = sld [smem:[#allocation19_spill]] (!%p1871_p13) }
  0x8c   : > { %422 = sbr.rel (%p1871_p13) target bundleno = 373 (0x175), region = 68  ;;  %v519_v2 = vand.u32 (!%p1871_p13), 2147483647, %v2769_v0  ;;  %v520_v3 = vand.u32 (!%p1871_p13), 2147483647, %v2771_v1  ;;  %v2777_v7 = vld [vmem:[#allocation9 + $0x18] sm:$0xff] (!%p1871_p13) }
  0x8d   : > { %v521_v8 = vand.u32 (!%p1871_p13), 2147483647, %v2775_v6  ;;  %v522_v9 = vand.u32 (!%p1871_p13), 2147483647, %v2777_v7  ;;  %v2781_v14 = vld [vmem:[#allocation9 + $0x20] sm:$0xff] (!%p1871_p13)  ;;  %v2783_v15 = vld [vmem:[#allocation9 + $0x28] sm:$0xff] (!%p1871_p13) }
  0x8e   : > { %v567_v4 = vsub.f32 (!%p1871_p13), 0.0, %v519_v2  ;;  %v568_v5 = vsub.f32 (!%p1871_p13), 0.0, %v520_v3  ;;  %v523_v16 = vand.u32 (!%p1871_p13), 2147483647, %v2781_v14  ;;  %v524_v19 = vand.u32 (!%p1871_p13), 2147483647, %v2783_v15 }
  0x8f   : > { %v569_v12 = vsub.f32 (!%p1871_p13), 0.0, %v521_v8  ;;  %v570_v13 = vsub.f32 (!%p1871_p13), 0.0, %v522_v9  ;;  %v2787_v21 = vld [vmem:[#allocation9 + $0x30] sm:$0xff] (!%p1871_p13)  ;;  %v2789_v23 = vld [vmem:[#allocation9 + $0x38] sm:$0xff] (!%p1871_p13)  ;;  %v2793_v29 = vld [vmem:[#allocation9 + $0x40] sm:$0xff] (!%p1871_p13)  ;;  %v471_v35 = vmax.f32 (!%p1871_p13), %v2769_v0, 0.0 }
  0x90   : > { %v615_v10 = vmul.f32 (!%p1871_p13), 1.442695, %v567_v4  ;;  %v617_v11 = vmul.f32 (!%p1871_p13), 1.442695, %v568_v5  ;;  %v571_v20 = vsub.f32 (!%p1871_p13), 0.0, %v523_v16  ;;  %v572_v22 = vsub.f32 (!%p1871_p13), 0.0, %v524_v19 }
  0x91   : > { %v619_v17 = vmul.f32 (!%p1871_p13), 1.442695, %v569_v12  ;;  %v621_v18 = vmul.f32 (!%p1871_p13), 1.442695, %v570_v13  ;;  %v525_v24 = vand.u32 (!%p1871_p13), 2147483647, %v2787_v21 }
  0x92   : > { %2077 = vpow2.f32 (!%p1871_p13), %v615_v10  ;;  %v623_v25 = vmul.f32 (!%p1871_p13), 1.442695, %v571_v20  ;;  %v526_v26 = vand.u32 (!%p1871_p13), 2147483647, %v2789_v23  ;;  %v625_v27 = vmul.f32 (!%p1871_p13), 1.442695, %v572_v22 }
  0x93   : > { %2079 = vpow2.f32 %v617_v11  ;;  %v573_v28 = vsub.f32 0.0, %v525_v24  ;;  %v2795_v31 = vld [vmem:[#allocation9 + $0x48] sm:$0xff]  ;;  %v527_v32 = vand.u32 2147483647, %v2793_v29  ;;  %v472_v36 = vmax.f32 %v2771_v1, 0.0  ;;  %v2801_v39 = vld [vmem:[#allocation9 + $0x50] sm:$0xff] }
  0x94   : > { %2081 = vpow2.f32 %v619_v17  ;;  %v574_v30 = vsub.f32 0.0, %v526_v26  ;;  %v528_v34 = vand.u32 2147483647, %v2795_v31  ;;  %v473_v40 = vmax.f32 %v2775_v6, 0.0  ;;  %v2807_v47 = vld [vmem:[#allocation9 + $0x58] sm:$0xff] }
  0x95   : > { %2083 = vpow2.f32 %v621_v18  ;;  %v627_v33 = vmul.f32 1.442695, %v573_v28  ;;  %v575_v38 = vsub.f32 0.0, %v527_v32  ;;  %v474_v41 = vmax.f32 %v2777_v7, 0.0 }
  0x96   : > { %2085 = vpow2.f32 %v623_v25  ;;  %v629_v37 = vmul.f32 1.442695, %v574_v30  ;;  %v475_v42 = vmax.f32 %v2781_v14, 0.0  ;;  %v476_v44 = vmax.f32 %v2783_v15, 0.0  ;;  %v1245_v15 = vld [vmem:[#allocation10 + $0x30] sm:$0xff] }
  0x97   : > { %2087 = vpow2.f32 %v625_v27  ;;  %v576_v45 = vsub.f32 0.0, %v528_v34  ;;  %v631_v46 = vmul.f32 1.442695, %v575_v38  ;;  %v529_v52 = vand.u32 2147483647, %v2801_v39 }
  0x98   : > { %2089 = vpow2.f32 %v627_v33  ;;  %v477_v55 = vmax.f32 %v2787_v21, 0.0  ;;  %v478_v58 = vmax.f32 %v2789_v23, 0.0  ;;  %v530_v59 = vand.u32 2147483647, %v2807_v47 }
  0x99   : > { %2091 = vpow2.f32 %v629_v37  ;;  %v633_v63 = vmul.f32 1.442695, %v576_v45  ;;  %v2817_v8 = vsub.f32 0.0, %v529_v52  ;;  %v479_v23 = vmax.f32 %v2793_v29, 0.0 }
  0x9a   : > { %2093 = vpow2.f32 %v631_v46 }
  0x9c   : > { %v2078_v43 = vpop.eup %2077 }
  0x9d   : > { %v2080_v48 = vpop.eup %2079  ;;  %v711_v49 = vadd.f32 1.0, %v2078_v43  ;;  %v714_v50 = vmul.f32 -0.5, %v2078_v43  ;;  %v717_v51 = vand.u32 2147483647, %v2078_v43 }
  0x9e   : > { %v720_v53 = vadd.f32 1.0, %v2080_v48  ;;  %v723_v54 = vmul.f32 -0.5, %v2080_v48  ;;  %v2082_v56 = vpop.eup %2081  ;;  %v726_v57 = vand.u32 2147483647, %v2080_v48 }
  0x9f   : > { %2095 = vlog2.f32 %v711_v49  ;;  %v2084_v60 = vpop.eup %2083  ;;  %v715_v61 = vadd.f32 1.0, %v714_v50  ;;  %v729_v62 = vadd.f32 1.0, %v2082_v56  ;;  %vm2813_vm0 = vcmp.lt.f32.partialorder %v717_v51, 0.0004427343 }
  0xa0   : > { %2097 = vlog2.f32 %v720_v53  ;;  %v732_v3 = vmul.f32 -0.5, %v2082_v56  ;;  %v735_v4 = vand.u32 2147483647, %v2082_v56  ;;  %v738_v5 = vadd.f32 1.0, %v2084_v60  ;;  %v2086_v9 = vpop.eup %2085 }
  0xa1   : > { %v724_v10 = vadd.f32 1.0, %v723_v54  ;;  %2099 = vlog2.f32 %v729_v62  ;;  %v741_v11 = vmul.f32 -0.5, %v2084_v60  ;;  %v744_v12 = vand.u32 2147483647, %v2084_v60  ;;  %v2088_v13 = vpop.eup %2087 }
  0xa2   : > { %vm2819_vm1 = vcmp.lt.f32.partialorder %v726_v57, 0.0004427343  ;;  %v733_v17 = vadd.f32 1.0, %v732_v3  ;;  %2101 = vlog2.f32 %v738_v5  ;;  %v747_v18 = vadd.f32 1.0, %v2086_v9  ;;  %v2090_v25 = vpop.eup %2089 }
  0xa3   : > { %v716_v19 = vmul.f32 %v2078_v43, %v715_v61  ;;  %vm2823_vm2 = vcmp.lt.f32.partialorder %v735_v4, 0.0004427343  ;;  %v742_v22 = vadd.f32 1.0, %v741_v11  ;;  %v750_v24 = vmul.f32 -0.5, %v2086_v9  ;;  %v2092_v30 = vpop.eup %2091  ;;  %v1239_v11 = vld [vmem:[#allocation10] sm:$0xff] }
  0xa4   : > { %2103 = vlog2.f32 %v747_v18  ;;  %v753_v26 = vand.u32 2147483647, %v2086_v9  ;;  %v756_v27 = vadd.f32 1.0, %v2088_v13  ;;  %v759_v28 = vmul.f32 -0.5, %v2088_v13  ;;  %v2831_v46 = vpop.eup %2093 }
  0xa5   : > { %v725_v32 = vmul.f32 %v2080_v48, %v724_v10  ;;  %vm2827_vm3 = vcmp.lt.f32.partialorder %v744_v12, 0.0004427343  ;;  %v751_v34 = vadd.f32 1.0, %v750_v24  ;;  %v762_v37 = vand.u32 2147483647, %v2088_v13  ;;  %v1244_v48 = vld [vmem:[#allocation10 + $0x28] sm:$0xff] }
  0xa6   : > { %v734_v38 = vmul.f32 %v2082_v56, %v733_v17  ;;  %2105 = vlog2.f32 %v756_v27  ;;  %v765_v43 = vadd.f32 1.0, %v2090_v25  ;;  %v768_v45 = vmul.f32 -0.5, %v2090_v25 }
  0xa7   : > { %v743_v49 = vmul.f32 %v2084_v60, %v742_v22  ;;  %v760_v50 = vadd.f32 1.0, %v759_v28  ;;  %v771_v51 = vand.u32 2147483647, %v2090_v25  ;;  %v774_v52 = vadd.f32 1.0, %v2092_v30 }
  0xa8   : > { %v752_v54 = vmul.f32 %v2086_v9, %v751_v34  ;;  %vm2833_vm4 = vcmp.lt.f32.partialorder %v753_v26, 0.0004427343  ;;  %2107 = vlog2.f32 %v765_v43  ;;  %v777_v57 = vmul.f32 -0.5, %v2092_v30  ;;  %v1192_v43 = vld [vmem:[#allocation7 + $0x8] sm:$0xff] }
  0xa9   : > { %v2096_v53 = vpop.eup %2095  ;;  %vm2837_vm5 = vcmp.lt.f32.partialorder %v762_v37, 0.0004427343  ;;  %v769_v3 = vadd.f32 1.0, %v768_v45  ;;  %2109 = vlog2.f32 %v774_v52  ;;  %v780_v5 = vand.u32 2147483647, %v2092_v30 }
  0xaa   : > { %v2098_v61 = vpop.eup %2097  ;;  %v713_v62 = vmul.f32 0.6931472, %v2096_v53  ;;  %v778_v4 = vadd.f32 1.0, %v777_v57  ;;  %2111 = vpow2.f32 %v633_v63  ;;  %v761_v12 = vmul.f32 %v2088_v13, %v760_v50  ;;  %v1240_v63 = vld [vmem:[#allocation10 + $0x8] sm:$0xff] }
  0xab   : > { %v722_v60 = vmul.f32 0.6931472, %v2098_v61  ;;  %v2100_v10 = vpop.eup %2099  ;;  %vm2843_vm6 = vcmp.lt.f32.partialorder %v771_v51, 0.0004427343  ;;  %v783_v18 = vadd.f32 1.0, %v2831_v46  ;;  %v786_v2 = vmul.f32 -0.5, %v2831_v46 }
  0xac   : > { %v719_v9 = vsel %vm2813_vm0, %v716_v19, %v713_v62  ;;  %v2102_v22 = vpop.eup %2101  ;;  %v731_v27 = vmul.f32 0.6931472, %v2100_v10  ;;  %v1191_v19 = vld [vmem:[#allocation7] sm:$0xff]  ;;  %v770_v34 = vmul.f32 %v2090_v25, %v769_v3  ;;  %v779_v0 = vmul.f32 %v2092_v30, %v778_v4  ;;  %v1242_v25 = vld [vmem:[#allocation10 + $0x18] sm:$0xff] }
  0xad   : > { %v728_v24 = vsel %vm2819_vm1, %v725_v32, %v722_v60  ;;  %v1143_v26 = vadd.f32 %v719_v9, %v471_v35  ;;  %v740_v28 = vmul.f32 0.6931472, %v2102_v22  ;;  %2113 = vlog2.f32 %v783_v18  ;;  %v1241_v32 = vld [vmem:[#allocation10 + $0x10] sm:$0xff]  ;;  %v1194_v62 = vld [vmem:[#allocation7 + $0x18] sm:$0xff] }
  0xae   : > { %v1144_v13 = vadd.f32 %v728_v24, %v472_v36  ;;  %v2104_v37 = vpop.eup %2103  ;;  %v737_v16 = vsel %vm2823_vm2, %v734_v38, %v731_v27  ;;  %vm2857_vm7 = vcmp.lt.f32.partialorder %v780_v5, 0.0004427343  ;;  %v1193_v38 = vld [vmem:[#allocation7 + $0x10] sm:$0xff]  ;;  %v787_v30 = vadd.f32 1.0, %v786_v2 }
  0xaf   : > { %v1287_v45 = vmul.f32 %v1239_v11, %v1143_v26  ;;  %v746_v1 = vsel %vm2827_vm3, %v743_v49, %v740_v28  ;;  %v1145_v36 = vadd.f32 %v737_v16, %v473_v40  ;;  %v749_v51 = vmul.f32 0.6931472, %v2104_v37  ;;  %v1243_v40 = vld [vmem:[#allocation10 + $0x20] sm:$0xff]  ;;  %v1196_v26 = vld [vmem:[#allocation7 + $0x28] sm:$0xff]  ;;  %v2901_v35 = vld [vmem:[#allocation9 + $0x70] sm:$0xff] }
  0xb0   : > { %v1288_v50 = vmul.f32 %v1240_v63, %v1144_v13  ;;  %v2106_v52 = vpop.eup %2105  ;;  %v1146_v20 = vadd.f32 %v746_v1, %v474_v41  ;;  %v578_v57 = vsub.f32 0.0, %v530_v59  ;;  %v789_v7 = vand.u32 2147483647, %v2831_v46  ;;  %v1195_v11 = vld [vmem:[#allocation7 + $0x20] sm:$0xff] }
  0xb1   : > { %v1335_v53 = vadd.f32 %v1287_v45, %v1191_v19  ;;  %v1289_v3 = vmul.f32 %v1241_v32, %v1145_v36  ;;  %v755_v33 = vsel %vm2833_vm4, %v752_v54, %v749_v51  ;;  %v758_v6 = vmul.f32 0.6931472, %v2106_v52  ;;  %v1198_v45 = vld [vmem:[#allocation7 + $0x38] sm:$0xff] }
  0xb2   : > { %v1336_v61 = vadd.f32 %v1288_v50, %v1192_v43  ;;  %v2108_v49 = vpop.eup %2107  ;;  %v1290_v60 = vmul.f32 %v1242_v25, %v1146_v20  ;;  %v1147_v4 = vadd.f32 %v755_v33, %v475_v42  ;;  %v635_v41 = vmul.f32 1.442695, %v2817_v8  ;;  %v1197_v43 = vld [vmem:[#allocation7 + $0x30] sm:$0xff]  ;;  %v2905_v36 = vld [vmem:[#allocation9 + $0x78] sm:$0xff]  ;;  %v2914_v33 = vld [vmem:[#allocation9 + $0x88] sm:$0xff] }
  0xb3   : > { %v2110_v5 = vpop.eup %2109  ;;  %v1337_v59 = vadd.f32 %v1289_v3, %v1193_v38  ;;  %v764_v9 = vsel %vm2837_vm5, %v761_v12, %v758_v6  ;;  %v767_v54 = vmul.f32 0.6931472, %v2108_v49  ;;  %v788_v63 = vmul.f32 %v2831_v46, %v787_v30  ;;  %v2911_v30 = vld [vmem:[#allocation9 + $0x80] sm:$0xff]  ;;  %v2931_v46 = vld [vmem:[#allocation9 + $0x98] sm:$0xff] }
  0xb4   : > { %v1383_v10 = vpack.c.bf16 %v1336_v61, %v1335_v53  ;;  %v2877_v18 = vpop.eup %2111  ;;  %v1338_v22 = vadd.f32 %v1290_v60, %v1194_v62  ;;  %v1148_v14 = vadd.f32 %v764_v9, %v476_v44  ;;  %v1291_v42 = vmul.f32 %v1243_v40, %v1147_v4  ;;  %v1246_v44 = vld [vmem:[#allocation10 + $0x38] sm:$0xff]  ;;  %v1247_v40 = vld [vmem:[#allocation10 + $0x40] sm:$0xff] }
  0xb5   : > { %v776_v24 = vmul.f32 0.6931472, %v2110_v5  ;;  %v773_v8 = vsel %vm2843_vm6, %v770_v34, %v767_v54  ;;  %v792_v56 = vadd.f32 1.0, %v2877_v18  ;;  %v637_v12 = vmul.f32 1.442695, %v578_v57 }
  0xb6   : > { %1407 = vst [vmem:[#allocation2] sm:$0xff] %v1383_v10  ;;  %v1384_v27 = vpack.c.bf16 %v1338_v22, %v1337_v59  ;;  %v1292_v2 = vmul.f32 %v1244_v48, %v1148_v14  ;;  %v1339_v13 = vadd.f32 %v1291_v42, %v1195_v11  ;;  %v1149_v37 = vadd.f32 %v773_v8, %v477_v55 }
  0xb7   : > { %v782_v19 = vsel %vm2857_vm7, %v779_v0, %v776_v24  ;;  %v2114_v28 = vpop.eup %2113  ;;  %vm2891_vm8 = vcmp.lt.f32.partialorder %v789_v7, 0.0004427343  ;;  %2115 = vlog2.f32 %v792_v56  ;;  %v795_v32 = vmul.f32 -0.5, %v2877_v18  ;;  %v2896_v0 = vld [vmem:[#allocation9 + $0x60] sm:$0xff] }
  0xb8   : > { %v1150_v17 = vadd.f32 %v782_v19, %v478_v58  ;;  %1408 = vst [vmem:[#allocation2 + $0x8] sm:$0xff] %v1384_v27  ;;  %v1340_v34 = vadd.f32 %v1292_v2, %v1196_v26  ;;  %v785_v16 = vmul.f32 0.6931472, %v2114_v28  ;;  %2117 = vpow2.f32 %v635_v41  ;;  %v2899_v58 = vld [vmem:[#allocation9 + $0x68] sm:$0xff]  ;;  %v1199_v24 = vld [vmem:[#allocation7 + $0x40] sm:$0xff] }
  0xb9   : > { %v1293_v21 = vmul.f32 %v1245_v15, %v1149_v37  ;;  %2119 = vpow2.f32 %v637_v12  ;;  %v798_v52 = vand.u32 2147483647, %v2877_v18  ;;  %v531_v53 = vand.u32 2147483647, %v2896_v0  ;;  %v1248_v2 = vld [vmem:[#allocation10 + $0x48] sm:$0xff] }
  0xba   : > { %v1294_v55 = vmul.f32 %v1246_v44, %v1150_v17  ;;  %v1385_v50 = vpack.c.bf16 %v1340_v34, %v1339_v13  ;;  %v791_v1 = vsel %vm2891_vm8, %v788_v63, %v785_v16  ;;  %v796_v20 = vadd.f32 1.0, %v795_v32  ;;  %v2929_v17 = vld [vmem:[#allocation9 + $0x90] sm:$0xff]  ;;  %v1200_v34 = vld [vmem:[#allocation7 + $0x48] sm:$0xff] }
  0xbb   : > { %v1341_v25 = vadd.f32 %v1293_v21, %v1197_v43  ;;  %v532_v29 = vand.u32 2147483647, %v2899_v58  ;;  %v533_v38 = vand.u32 2147483647, %v2901_v35  ;;  %v1151_v61 = vadd.f32 %v791_v1, %v479_v23 }
  0xbc   : > { %v1342_v51 = vadd.f32 %v1294_v55, %v1198_v45  ;;  %1409 = vst [vmem:[#allocation2 + $0x10] sm:$0xff] %v1385_v50  ;;  %v579_v62 = vsub.f32 0.0, %v531_v53  ;;  %v534_v3 = vand.u32 2147483647, %v2905_v36  ;;  %v480_v6 = vmax.f32 %v2795_v31, 0.0  ;;  %v1201_v53 = vld [vmem:[#allocation7 + $0x50] sm:$0xff] }
  0xbd   : > { %v580_v49 = vsub.f32 0.0, %v532_v29  ;;  %v581_v60 = vsub.f32 0.0, %v533_v38  ;;  %v481_v4 = vmax.f32 %v2801_v39, 0.0  ;;  %v535_v5 = vand.u32 2147483647, %v2911_v30 }
  0xbe   : > { %v1386_v57 = vpack.c.bf16 %v1342_v51, %v1341_v25  ;;  %v639_v7 = vmul.f32 1.442695, %v579_v62  ;;  %v582_v41 = vsub.f32 0.0, %v534_v3  ;;  %v797_v10 = vmul.f32 %v2877_v18, %v796_v20 }
  0xbf   : > { %v641_v59 = vmul.f32 1.442695, %v580_v49  ;;  %v643_v9 = vmul.f32 1.442695, %v581_v60  ;;  %v536_v11 = vand.u32 2147483647, %v2914_v33  ;;  %v1295_v31 = vmul.f32 %v1247_v40, %v1151_v61 }
  0xc0   : > { %1410 = vst [vmem:[#allocation2 + $0x18] sm:$0xff] %v1386_v57  ;;  %vm2921_vm9 = vcmp.lt.f32.partialorder %v798_v52, 0.0004427343  ;;  %v482_v22 = vmax.f32 %v2807_v47, 0.0  ;;  %2121 = vpow2.f32 %v639_v7  ;;  %v645_v26 = vmul.f32 1.442695, %v582_v41 }
  0xc1   : > { %v2116_v48 = vpop.eup %2115  ;;  %2123 = vpow2.f32 %v641_v59  ;;  %v583_v8 = vsub.f32 0.0, %v535_v5  ;;  %v584_v12 = vsub.f32 0.0, %v536_v11  ;;  %v483_v15 = vmax.f32 %v2896_v0, 0.0  ;;  %v2948_v40 = vld [vmem:[#allocation9 + $0xa0] sm:$0xff]  ;;  %v2950_v49 = vld [vmem:[#allocation9 + $0xa8] sm:$0xff]  ;;  %v2952_v59 = vld [vmem:[#allocation9 + $0xb0] sm:$0xff] }
  0xc2   : > { %v2118_v14 = vpop.eup %2117  ;;  %v794_v42 = vmul.f32 0.6931472, %v2116_v48  ;;  %2125 = vpow2.f32 %v643_v9  ;;  %v1343_v28 = vadd.f32 %v1295_v31, %v1199_v24  ;;  %v484_v23 = vmax.f32 %v2899_v58, 0.0  ;;  %v1204_v0 = vld [vmem:[#allocation7 + $0x68] sm:$0xff] }
  0xc3   : > { %v2120_v18 = vpop.eup %2119  ;;  %v801_v63 = vadd.f32 1.0, %v2118_v14  ;;  %v804_v56 = vmul.f32 -0.5, %v2118_v14  ;;  %v807_v37 = vand.u32 2147483647, %v2118_v14  ;;  %v647_v16 = vmul.f32 1.442695, %v583_v8 }
  0xc4   : > { %v800_v27 = vsel %vm2921_vm9, %v797_v10, %v794_v42  ;;  %v810_v13 = vadd.f32 1.0, %v2120_v18  ;;  %v813_v19 = vmul.f32 -0.5, %v2120_v18  ;;  %v816_v45 = vand.u32 2147483647, %v2120_v18 }
  0xc5   : > { %v1152_v44 = vadd.f32 %v800_v27, %v480_v6  ;;  %2127 = vlog2.f32 %v801_v63  ;;  %v805_v43 = vadd.f32 1.0, %v804_v56  ;;  %v649_v55 = vmul.f32 1.442695, %v584_v12 }
  0xc6   : > { %2129 = vlog2.f32 %v810_v13  ;;  %v814_v21 = vadd.f32 1.0, %v813_v19  ;;  %v537_v50 = vand.u32 2147483647, %v2929_v17  ;;  %v538_v1 = vand.u32 2147483647, %v2931_v46 }
  0xc7   : > { %v1296_v32 = vmul.f32 %v1248_v2, %v1152_v44  ;;  %2131 = vpow2.f32 %v645_v26  ;;  %v485_v51 = vmax.f32 %v2901_v35, 0.0  ;;  %v486_v52 = vmax.f32 %v2905_v36, 0.0 }
  0xc8   : > { %2133 = vpow2.f32 %v647_v16  ;;  %vm2938_vm10 = vcmp.lt.f32.partialorder %v807_v37, 0.0004427343  ;;  %v487_v20 = vmax.f32 %v2911_v30, 0.0  ;;  %v488_v29 = vmax.f32 %v2914_v33, 0.0 }
  0xc9   : > { %v1344_v25 = vadd.f32 %v1296_v32, %v1200_v34  ;;  %2135 = vpow2.f32 %v649_v55  ;;  %v585_v38 = vsub.f32 0.0, %v537_v50  ;;  %v806_v62 = vmul.f32 %v2118_v14, %v805_v43  ;;  %v1249_v43 = vld [vmem:[#allocation10 + $0x50] sm:$0xff] }
  0xca   : > { %v2122_v57 = vpop.eup %2121  ;;  %v815_v3 = vmul.f32 %v2120_v18, %v814_v21  ;;  %vm2944_vm11 = vcmp.lt.f32.partialorder %v816_v45, 0.0004427343  ;;  %v586_v10 = vsub.f32 0.0, %v538_v1  ;;  %v539_v24 = vand.u32 2147483647, %v2948_v40  ;;  %v1250_v1 = vld [vmem:[#allocation10 + $0x58] sm:$0xff] }
  0xcb   : > { %v1387_v61 = vpack.c.bf16 %v1344_v25, %v1343_v28  ;;  %v2124_v60 = vpop.eup %2123  ;;  %v819_v7 = vadd.f32 1.0, %v2122_v57  ;;  %v822_v41 = vmul.f32 -0.5, %v2122_v57  ;;  %v825_v5 = vand.u32 2147483647, %v2122_v57  ;;  %v3003_v28 = vld [vmem:[#allocation9 + $0xb8] sm:$0xff] }
  0xcc   : > { %v2126_v9 = vpop.eup %2125  ;;  %v828_v11 = vadd.f32 1.0, %v2124_v60  ;;  %v831_v48 = vmul.f32 -0.5, %v2124_v60  ;;  %v834_v54 = vand.u32 2147483647, %v2124_v60  ;;  %v651_v31 = vmul.f32 1.442695, %v585_v38 }
  0xcd   : > { %1411 = vst [vmem:[#allocation2 + $0x20] sm:$0xff] %v1387_v61  ;;  %2137 = vlog2.f32 %v819_v7  ;;  %v823_v14 = vadd.f32 1.0, %v822_v41  ;;  %v837_v42 = vadd.f32 1.0, %v2126_v9  ;;  %v840_v8 = vmul.f32 -0.5, %v2126_v9  ;;  %v1202_v7 = vld [vmem:[#allocation7 + $0x58] sm:$0xff] }
  0xce   : > { %2139 = vlog2.f32 %v828_v11  ;;  %v540_v18 = vand.u32 2147483647, %v2950_v49  ;;  %v541_v63 = vand.u32 2147483647, %v2952_v59  ;;  %vm2957_vm12 = vcmp.lt.f32.partialorder %v825_v5, 0.0004427343 }
  0xcf   : > { %v2128_v26 = vpop.eup %2127  ;;  %2141 = vlog2.f32 %v837_v42  ;;  %v653_v2 = vmul.f32 1.442695, %v586_v10  ;;  %v832_v44 = vadd.f32 1.0, %v831_v48  ;;  %vm2961_vm13 = vcmp.lt.f32.partialorder %v834_v54, 0.0004427343 }
  0xd0   : > { %v2130_v56 = vpop.eup %2129  ;;  %v803_v12 = vmul.f32 0.6931472, %v2128_v26  ;;  %2143 = vpow2.f32 %v651_v31  ;;  %v824_v45 = vmul.f32 %v2122_v57, %v823_v14  ;;  %v841_v25 = vadd.f32 1.0, %v840_v8 }
  0xd1   : > { %v2132_v13 = vpop.eup %2131  ;;  %v812_v19 = vmul.f32 0.6931472, %v2130_v56  ;;  %v843_v38 = vand.u32 2147483647, %v2126_v9  ;;  %v833_v5 = vmul.f32 %v2124_v60, %v832_v44  ;;  %v587_v60 = vsub.f32 0.0, %v539_v24  ;;  %v1258_v44 = vld [vmem:[#allocation10 + $0x98] sm:$0xff] }
  0xd2   : > { %v2134_v37 = vpop.eup %2133  ;;  %v809_v34 = vsel %vm2938_vm10, %v806_v62, %v803_v12  ;;  %v846_v16 = vadd.f32 1.0, %v2132_v13  ;;  %v849_v32 = vmul.f32 -0.5, %v2132_v13  ;;  %v852_v62 = vand.u32 2147483647, %v2132_v13 }
  0xd3   : > { %v2967_v21 = vpop.eup %2135  ;;  %v818_v55 = vsel %vm2944_vm11, %v815_v3, %v812_v19  ;;  %v1153_v50 = vadd.f32 %v809_v34, %v481_v4  ;;  %v855_v57 = vadd.f32 1.0, %v2134_v37  ;;  %v858_v11 = vmul.f32 -0.5, %v2134_v37 }
  0xd4   : > { %v1154_v61 = vadd.f32 %v818_v55, %v482_v22  ;;  %2145 = vlog2.f32 %v846_v16  ;;  %v850_v10 = vadd.f32 1.0, %v849_v32  ;;  %v861_v3 = vand.u32 2147483647, %v2134_v37  ;;  %v1251_v32 = vld [vmem:[#allocation10 + $0x60] sm:$0xff] }
  0xd5   : > { %v1297_v41 = vmul.f32 %v1249_v43, %v1153_v50  ;;  %2147 = vlog2.f32 %v855_v57  ;;  %v864_v39 = vadd.f32 1.0, %v2967_v21  ;;  %v842_v48 = vmul.f32 %v2126_v9, %v841_v25 }
  0xd6   : > { %v1298_v6 = vmul.f32 %v1250_v1, %v1154_v61  ;;  %vm2976_vm14 = vcmp.lt.f32.partialorder %v843_v38, 0.0004427343  ;;  %v867_v47 = vmul.f32 -0.5, %v2967_v21  ;;  %vm2981_vm15 = vcmp.lt.f32.partialorder %v852_v62, 0.0004427343  ;;  %v1252_v1 = vld [vmem:[#allocation10 + $0x68] sm:$0xff] }
  0xd7   : > { %v1345_v4 = vadd.f32 %v1297_v41, %v1201_v53  ;;  %v2138_v22 = vpop.eup %2137  ;;  %2149 = vlog2.f32 %v864_v39  ;;  %v851_v8 = vmul.f32 %v2132_v13, %v850_v10  ;;  %v859_v56 = vadd.f32 1.0, %v858_v11  ;;  %v1253_v61 = vld [vmem:[#allocation10 + $0x70] sm:$0xff] }
  0xd8   : > { %v1346_v31 = vadd.f32 %v1298_v6, %v1202_v7  ;;  %v2140_v42 = vpop.eup %2139  ;;  %v821_v26 = vmul.f32 0.6931472, %v2138_v22  ;;  %2151 = vpow2.f32 %v653_v2  ;;  %vm2985_vm0 = vcmp.lt.f32.partialorder %v861_v3, 0.0004427343 }
  0xd9   : > { %v2142_v9 = vpop.eup %2141  ;;  %v830_v19 = vmul.f32 0.6931472, %v2140_v42  ;;  %v868_v34 = vadd.f32 1.0, %v867_v47  ;;  %v588_v55 = vsub.f32 0.0, %v540_v18  ;;  %v655_v50 = vmul.f32 1.442695, %v587_v60 }
  0xda   : > { %v1388_v12 = vpack.c.bf16 %v1346_v31, %v1345_v4  ;;  %v2989_v43 = vpop.eup %2143  ;;  %v827_v16 = vsel %vm2957_vm12, %v824_v45, %v821_v26  ;;  %v839_v24 = vmul.f32 0.6931472, %v2142_v9  ;;  %v870_v25 = vand.u32 2147483647, %v2967_v21  ;;  %v1203_v45 = vld [vmem:[#allocation7 + $0x60] sm:$0xff]  ;;  %v1254_v4 = vld [vmem:[#allocation10 + $0x78] sm:$0xff] }
  0xdb   : > { %v836_v2 = vsel %vm2961_vm13, %v833_v5, %v830_v19  ;;  %v1155_v13 = vadd.f32 %v827_v16, %v483_v15  ;;  %v873_v38 = vadd.f32 1.0, %v2989_v43  ;;  %v860_v53 = vmul.f32 %v2134_v37, %v859_v56  ;;  %v1206_v42 = vld [vmem:[#allocation7 + $0x78] sm:$0xff]  ;;  %v1255_v56 = vld [vmem:[#allocation10 + $0x80] sm:$0xff]  ;;  %v1256_v16 = vld [vmem:[#allocation10 + $0x88] sm:$0xff] }
  0xdc   : > { %1412 = vst [vmem:[#allocation2 + $0x28] sm:$0xff] %v1388_v12  ;;  %v1156_v27 = vadd.f32 %v836_v2, %v484_v23  ;;  %v845_v18 = vsel %vm2976_vm14, %v842_v48, %v839_v24  ;;  %2153 = vpow2.f32 %v655_v50  ;;  %v876_v7 = vmul.f32 -0.5, %v2989_v43  ;;  %v1207_v19 = vld [vmem:[#allocation7 + $0x80] sm:$0xff]  ;;  %v1208_v2 = vld [vmem:[#allocation7 + $0x88] sm:$0xff] }
  0xdd   : > { %v1299_v15 = vmul.f32 %v1251_v32, %v1155_v13  ;;  %v1157_v57 = vadd.f32 %v845_v18, %v485_v51  ;;  %2155 = vlog2.f32 %v873_v38  ;;  %v869_v41 = vmul.f32 %v2967_v21, %v868_v34  ;;  %v1205_v51 = vld [vmem:[#allocation7 + $0x70] sm:$0xff]  ;;  %v3043_v38 = vld [vmem:[#allocation9 + $0xc8] sm:$0xff] }
  0xde   : > { %v2146_v62 = vpop.eup %2145  ;;  %v1300_v58 = vmul.f32 %v1252_v1, %v1156_v27  ;;  %v657_v5 = vmul.f32 1.442695, %v588_v55  ;;  %v879_v6 = vand.u32 2147483647, %v2989_v43  ;;  %v542_v3 = vand.u32 2147483647, %v3003_v28 }
  0xdf   : > { %v848_v23 = vmul.f32 0.6931472, %v2146_v62  ;;  %v2148_v10 = vpop.eup %2147  ;;  %v1347_v11 = vadd.f32 %v1299_v15, %v1203_v45  ;;  %v1301_v37 = vmul.f32 %v1253_v61, %v1157_v57  ;;  %vm3015_vm1 = vcmp.lt.f32.partialorder %v870_v25, 0.0004427343  ;;  %v3041_v25 = vld [vmem:[#allocation9 + $0xc0] sm:$0xff] }
  0xe0   : > { %v1348_v39 = vadd.f32 %v1300_v58, %v1204_v0  ;;  %v857_v48 = vmul.f32 0.6931472, %v2148_v10  ;;  %2157 = vpow2.f32 %v657_v5  ;;  %v877_v22 = vadd.f32 1.0, %v876_v7 }
  0xe1   : > { %v854_v35 = vsel %vm2981_vm15, %v851_v8, %v848_v23  ;;  %v2150_v54 = vpop.eup %2149  ;;  %v589_v31 = vsub.f32 0.0, %v541_v63  ;;  %v590_v9 = vsub.f32 0.0, %v542_v3  ;;  %v489_v32 = vmax.f32 %v2929_v17, 0.0 }
  0xe2   : > { %v1158_v21 = vadd.f32 %v854_v35, %v486_v52  ;;  %v3021_v60 = vpop.eup %2151  ;;  %v1389_v14 = vpack.c.bf16 %v1348_v39, %v1347_v11  ;;  %v863_v26 = vsel %vm2985_vm0, %v860_v53, %v857_v48  ;;  %v866_v8 = vmul.f32 0.6931472, %v2150_v54 }
  0xe3   : > { %v1349_v52 = vadd.f32 %v1301_v37, %v1205_v51  ;;  %v1159_v12 = vadd.f32 %v863_v26, %v487_v20  ;;  %v882_v34 = vadd.f32 1.0, %v3021_v60  ;;  %vm3031_vm2 = vcmp.lt.f32.partialorder %v879_v6, 0.0004427343  ;;  %v1257_v6 = vld [vmem:[#allocation10 + $0x90] sm:$0xff] }
  0xe4   : > { %v1302_v36 = vmul.f32 %v1254_v4, %v1158_v21  ;;  %1413 = vst [vmem:[#allocation2 + $0x30] sm:$0xff] %v1389_v14  ;;  %v872_v63 = vsel %vm3015_vm1, %v869_v41, %v866_v8  ;;  %v659_v24 = vmul.f32 1.442695, %v589_v31  ;;  %v878_v13 = vmul.f32 %v2989_v43, %v877_v22  ;;  %v3057_v51 = vld [vmem:[#allocation9 + $0xd0] sm:$0xff]  ;;  %v3064_v21 = vld [vmem:[#allocation9 + $0xd8] sm:$0xff] }
  0xe5   : > { %v1160_v30 = vadd.f32 %v872_v63, %v488_v29  ;;  %v1303_v20 = vmul.f32 %v1255_v56, %v1159_v12  ;;  %2159 = vlog2.f32 %v882_v34  ;;  %v885_v1 = vmul.f32 -0.5, %v3021_v60  ;;  %v1209_v34 = vld [vmem:[#allocation7 + $0x90] sm:$0xff] }
  0xe6   : > { %v1350_v55 = vadd.f32 %v1302_v36, %v1206_v42  ;;  %v3037_v50 = vpop.eup %2153  ;;  %2161 = vpow2.f32 %v659_v24  ;;  %v661_v17 = vmul.f32 1.442695, %v590_v9  ;;  %v490_v61 = vmax.f32 %v2931_v46, 0.0 }
  0xe7   : > { %v2156_v27 = vpop.eup %2155  ;;  %v1304_v18 = vmul.f32 %v1256_v16, %v1160_v30  ;;  %v1351_v33 = vadd.f32 %v1303_v20, %v1207_v19  ;;  %v891_v29 = vadd.f32 1.0, %v3037_v50  ;;  %v888_v62 = vand.u32 2147483647, %v3021_v60 }
  0xe8   : > { %v1390_v45 = vpack.c.bf16 %v1350_v55, %v1349_v52  ;;  %v875_v53 = vmul.f32 0.6931472, %v2156_v27  ;;  %v491_v43 = vmax.f32 %v2948_v40, 0.0  ;;  %v543_v15 = vand.u32 2147483647, %v3041_v25  ;;  %v3082_v27 = vld [vmem:[#allocation9 + $0xe0] sm:$0xff] }
  0xe9   : > { %v1352_v0 = vadd.f32 %v1304_v18, %v1208_v2  ;;  %2163 = vlog2.f32 %v891_v29  ;;  %v544_v57 = vand.u32 2147483647, %v3043_v38  ;;  %v886_v23 = vadd.f32 1.0, %v885_v1  ;;  %v1211_v40 = vld [vmem:[#allocation7 + $0xa0] sm:$0xff] }
  0xea   : > { %1414 = vst [vmem:[#allocation2 + $0x38] sm:$0xff] %v1390_v45  ;;  %v2158_v7 = vpop.eup %2157  ;;  %v881_v58 = vsel %vm3031_vm2, %v878_v13, %v875_v53  ;;  %v894_v41 = vmul.f32 -0.5, %v3037_v50  ;;  %2165 = vpow2.f32 %v661_v17  ;;  %v492_v5 = vmax.f32 %v2950_v49, 0.0  ;;  %v1210_v13 = vld [vmem:[#allocation7 + $0x98] sm:$0xff] }
  0xeb   : > { %v1391_v46 = vpack.c.bf16 %v1352_v0, %v1351_v33  ;;  %v900_v10 = vadd.f32 1.0, %v2158_v7  ;;  %v493_v11 = vmax.f32 %v2952_v59, 0.0  ;;  %v1161_v37 = vadd.f32 %v881_v58, %v489_v32  ;;  %v1259_v58 = vld [vmem:[#allocation10 + $0xa0] sm:$0xff] }
  0xec   : > { %v494_v3 = vmax.f32 %v3003_v28, 0.0  ;;  %v591_v39 = vsub.f32 0.0, %v543_v15  ;;  %v592_v35 = vsub.f32 0.0, %v544_v57  ;;  %vm3059_vm3 = vcmp.lt.f32.partialorder %v888_v62, 0.0004427343  ;;  %v3084_v57 = vld [vmem:[#allocation9 + $0xe8] sm:$0xff] }
  0xed   : > { %1415 = vst [vmem:[#allocation2 + $0x40] sm:$0xff] %v1391_v46  ;;  %v897_v48 = vand.u32 2147483647, %v3037_v50  ;;  %2167 = vlog2.f32 %v900_v10  ;;  %v903_v54 = vmul.f32 -0.5, %v2158_v7  ;;  %v887_v47 = vmul.f32 %v3021_v60, %v886_v23  ;;  %v1212_v60 = vld [vmem:[#allocation7 + $0xa8] sm:$0xff] }
  0xee   : > { %v895_v22 = vadd.f32 1.0, %v894_v41  ;;  %v663_v31 = vmul.f32 1.442695, %v591_v39  ;;  %v665_v14 = vmul.f32 1.442695, %v592_v35  ;;  %v495_v8 = vmax.f32 %v3041_v25, 0.0 }
  0xef   : > { %v2160_v42 = vpop.eup %2159  ;;  %v906_v26 = vand.u32 2147483647, %v2158_v7  ;;  %v496_v56 = vmax.f32 %v3043_v38, 0.0  ;;  %v545_v9 = vand.u32 2147483647, %v3057_v51  ;;  %v1305_v12 = vmul.f32 %v1257_v6, %v1161_v37 }
  0xf0   : > { %v2162_v36 = vpop.eup %2161  ;;  %v884_v52 = vmul.f32 0.6931472, %v2160_v42  ;;  %2169 = vpow2.f32 %v663_v31  ;;  %v546_v19 = vand.u32 2147483647, %v3064_v21  ;;  %vm3071_vm4 = vcmp.lt.f32.partialorder %v897_v48, 0.0004427343 }
  0xf1   : > { %v904_v63 = vadd.f32 1.0, %v903_v54  ;;  %v909_v16 = vadd.f32 1.0, %v2162_v36  ;;  %2171 = vpow2.f32 %v665_v14  ;;  %v896_v24 = vmul.f32 %v3037_v50, %v895_v22 }
  0xf2   : > { %v890_v32 = vsel %vm3059_vm3, %v887_v47, %v884_v52  ;;  %v593_v55 = vsub.f32 0.0, %v545_v9  ;;  %v594_v30 = vsub.f32 0.0, %v546_v19  ;;  %vm3078_vm5 = vcmp.lt.f32.partialorder %v906_v26, 0.0004427343 }
  0xf3   : > { %v2164_v20 = vpop.eup %2163  ;;  %v1162_v2 = vadd.f32 %v890_v32, %v490_v61  ;;  %2173 = vlog2.f32 %v909_v16  ;;  %v912_v17 = vmul.f32 -0.5, %v2162_v36  ;;  %v1353_v18 = vadd.f32 %v1305_v12, %v1209_v34 }
  0xf4   : > { %v2166_v45 = vpop.eup %2165  ;;  %v893_v33 = vmul.f32 0.6931472, %v2164_v20  ;;  %v667_v29 = vmul.f32 1.442695, %v593_v55  ;;  %v669_v53 = vmul.f32 1.442695, %v594_v30  ;;  %v905_v50 = vmul.f32 %v2158_v7, %v904_v63 }
  0xf5   : > { %v1306_v62 = vmul.f32 %v1258_v44, %v1162_v2  ;;  %v915_v0 = vand.u32 2147483647, %v2162_v36  ;;  %v918_v15 = vadd.f32 1.0, %v2166_v45  ;;  %v921_v23 = vmul.f32 -0.5, %v2166_v45  ;;  %v3115_v2 = vld [vmem:[#allocation9 + $0xf0] sm:$0xff] }
  0xf6   : > { %v899_v61 = vsel %vm3071_vm4, %v896_v24, %v893_v33  ;;  %2175 = vpow2.f32 %v667_v29  ;;  %v547_v41 = vand.u32 2147483647, %v3082_v27  ;;  %v913_v6 = vadd.f32 1.0, %v912_v17 }
  0xf7   : > { %v2168_v46 = vpop.eup %2167  ;;  %v1354_v10 = vadd.f32 %v1306_v62, %v1210_v13  ;;  %v1163_v37 = vadd.f32 %v899_v61, %v491_v43  ;;  %2177 = vlog2.f32 %v918_v15  ;;  %v497_v39 = vmax.f32 %v3057_v51, 0.0  ;;  %v1260_v43 = vld [vmem:[#allocation10 + $0xa8] sm:$0xff] }
  0xf8   : > { %v902_v7 = vmul.f32 0.6931472, %v2168_v46  ;;  %2179 = vpow2.f32 %v669_v53  ;;  %v548_v35 = vand.u32 2147483647, %v3084_v57  ;;  %v498_v54 = vmax.f32 %v3064_v21, 0.0 }
  0xf9   : > { %v1392_v4 = vpack.c.bf16 %v1354_v10, %v1353_v18  ;;  %v1307_v48 = vmul.f32 %v1259_v58, %v1163_v37  ;;  %v595_v47 = vsub.f32 0.0, %v547_v41  ;;  %v922_v14 = vadd.f32 1.0, %v921_v23  ;;  %v3119_v18 = vld [vmem:[#allocation9 + $0xf8] sm:$0xff] }
  0xfa   : > { %v3094_v22 = vpop.eup %2169  ;;  %v908_v31 = vsel %vm3078_vm5, %v905_v50, %v902_v7  ;;  %v924_v42 = vand.u32 2147483647, %v2166_v45  ;;  %v499_v26 = vmax.f32 %v3082_v27, 0.0  ;;  %v914_v12 = vmul.f32 %v2162_v36, %v913_v6 }
  0xfb   : > { %v3099_v9 = vpop.eup %2171  ;;  %1416 = vst [vmem:[#allocation2 + $0x48] sm:$0xff] %v1392_v4  ;;  %v1164_v52 = vadd.f32 %v908_v31, %v492_v5  ;;  %vm3103_vm6 = vcmp.lt.f32.partialorder %v915_v0, 0.0004427343  ;;  %v927_v34 = vadd.f32 1.0, %v3094_v22  ;;  %v930_v63 = vmul.f32 -0.5, %v3094_v22  ;;  %v1262_v4 = vld [vmem:[#allocation10 + $0xb8] sm:$0xff] }
  0xfc   : > { %v936_v16 = vadd.f32 1.0, %v3099_v9  ;;  %v939_v32 = vmul.f32 -0.5, %v3099_v9  ;;  %v596_v44 = vsub.f32 0.0, %v548_v35  ;;  %v1355_v30 = vadd.f32 %v1307_v48, %v1211_v40 }
  0xfd   : > { %v2174_v24 = vpop.eup %2173  ;;  %v1308_v55 = vmul.f32 %v1260_v43, %v1164_v52  ;;  %2181 = vlog2.f32 %v927_v34  ;;  %v671_v49 = vmul.f32 1.442695, %v595_v47  ;;  %v923_v36 = vmul.f32 %v2166_v45, %v922_v14  ;;  %v1261_v45 = vld [vmem:[#allocation10 + $0xb0] sm:$0xff]  ;;  %v1214_v43 = vld [vmem:[#allocation7 + $0xb8] sm:$0xff] }
  0xfe   : > { %v911_v5 = vmul.f32 0.6931472, %v2174_v24  ;;  %vm3111_vm7 = vcmp.lt.f32.partialorder %v924_v42, 0.0004427343  ;;  %2183 = vlog2.f32 %v936_v16  ;;  %v933_v1 = vand.u32 2147483647, %v3094_v22 }
  0xff   : > { %v1356_v13 = vadd.f32 %v1308_v55, %v1212_v60  ;;  %v942_v17 = vand.u32 2147483647, %v3099_v9  ;;  %2185 = vpow2.f32 %v671_v49  ;;  %v931_v53 = vadd.f32 1.0, %v930_v63  ;;  %v3146_v60 = vld [vmem:[#allocation9 + $0x100] sm:$0xff]  ;;  %v3183_v52 = vld [vmem:[#allocation9 + $0x110] sm:$0xff] }
 0x100   : > { %v2176_v33 = vpop.eup %2175  ;;  %v917_v29 = vsel %vm3103_vm6, %v914_v12, %v911_v5  ;;  %v940_v62 = vadd.f32 1.0, %v939_v32  ;;  %v673_v50 = vmul.f32 1.442695, %v596_v44  ;;  %v549_v23 = vand.u32 2147483647, %v3115_v2  ;;  %v3153_v32 = vld [vmem:[#allocation9 + $0x108] sm:$0xff] }
 0x101   : > { %v2178_v0 = vpop.eup %2177  ;;  %v1393_v15 = vpack.c.bf16 %v1356_v13, %v1355_v30  ;;  %v1165_v61 = vadd.f32 %v917_v29, %v493_v11  ;;  %v945_v58 = vadd.f32 1.0, %v2176_v33  ;;  %v948_v10 = vmul.f32 -0.5, %v2176_v33  ;;  %v1213_v11 = vld [vmem:[#allocation7 + $0xb0] sm:$0xff] }
 0x102   : > { %v3126_v41 = vpop.eup %2179  ;;  %v920_v46 = vmul.f32 0.6931472, %v2178_v0  ;;  %2187 = vpow2.f32 %v673_v50  ;;  %v550_v37 = vand.u32 2147483647, %v3119_v18  ;;  %v951_v7 = vand.u32 2147483647, %v2176_v33 }
 0x103   : > { %1417 = vst [vmem:[#allocation2 + $0x50] sm:$0xff] %v1393_v15  ;;  %v1309_v6 = vmul.f32 %v1261_v45, %v1165_v61  ;;  %2189 = vlog2.f32 %v945_v58  ;;  %v954_v35 = vadd.f32 1.0, %v3126_v41  ;;  %v957_v48 = vmul.f32 -0.5, %v3126_v41  ;;  %v1264_v15 = vld [vmem:[#allocation10 + $0xc8] sm:$0xff] }
 0x104   : > { %v926_v59 = vsel %vm3111_vm7, %v923_v36, %v920_v46  ;;  %v500_v47 = vmax.f32 %v3084_v57, 0.0  ;;  %v501_v31 = vmax.f32 %v3115_v2, 0.0  ;;  %v932_v14 = vmul.f32 %v3094_v22, %v931_v53  ;;  %v1217_v22 = vld [vmem:[#allocation7 + $0xd0] sm:$0xff] }
 0x105   : > { %v1166_v40 = vadd.f32 %v926_v59, %v494_v3  ;;  %vm3138_vm8 = vcmp.lt.f32.partialorder %v933_v1, 0.0004427343  ;;  %2191 = vlog2.f32 %v954_v35  ;;  %vm3142_vm9 = vcmp.lt.f32.partialorder %v942_v17, 0.0004427343  ;;  %v1263_v17 = vld [vmem:[#allocation10 + $0xc0] sm:$0xff] }
 0x106   : > { %v949_v12 = vadd.f32 1.0, %v948_v10  ;;  %v597_v19 = vsub.f32 0.0, %v549_v23  ;;  %v598_v34 = vsub.f32 0.0, %v550_v37  ;;  %v1357_v3 = vadd.f32 %v1309_v6, %v1213_v11  ;;  %v1215_v23 = vld [vmem:[#allocation7 + $0xc0] sm:$0xff]  ;;  %v1216_v37 = vld [vmem:[#allocation7 + $0xc8] sm:$0xff] }
 0x107   : > { %v2182_v63 = vpop.eup %2181  ;;  %v1310_v28 = vmul.f32 %v1262_v4, %v1166_v40  ;;  %v941_v16 = vmul.f32 %v3099_v9, %v940_v62  ;;  %vm3149_vm10 = vcmp.lt.f32.partialorder %v951_v7, 0.0004427343  ;;  %v958_v55 = vadd.f32 1.0, %v957_v48 }
 0x108   : > { %v2184_v44 = vpop.eup %2183  ;;  %v929_v24 = vmul.f32 0.6931472, %v2182_v63  ;;  %v502_v30 = vmax.f32 %v3119_v18, 0.0  ;;  %v675_v49 = vmul.f32 1.442695, %v597_v19  ;;  %v950_v29 = vmul.f32 %v2176_v33, %v949_v12 }
 0x109   : > { %v3156_v5 = vpop.eup %2185  ;;  %v1358_v36 = vadd.f32 %v1310_v28, %v1214_v43  ;;  %v938_v20 = vmul.f32 0.6931472, %v2184_v44  ;;  %v960_v13 = vand.u32 2147483647, %v3126_v41  ;;  %v551_v9 = vand.u32 2147483647, %v3146_v60 }
 0x10a   : > { %v935_v1 = vsel %vm3138_vm8, %v932_v14, %v929_v24  ;;  %v963_v45 = vadd.f32 1.0, %v3156_v5  ;;  %v677_v53 = vmul.f32 1.442695, %v598_v34  ;;  %2193 = vpow2.f32 %v675_v49  ;;  %v1265_v14 = vld [vmem:[#allocation10 + $0xd0] sm:$0xff]  ;;  %v3188_v28 = vld [vmem:[#allocation9 + $0x118] sm:$0xff] }
 0x10b   : > { %v1394_v62 = vpack.c.bf16 %v1358_v36, %v1357_v3  ;;  %v944_v50 = vsel %vm3142_vm9, %v941_v16, %v938_v20  ;;  %v1167_v0 = vadd.f32 %v935_v1, %v495_v8  ;;  %v959_v33 = vmul.f32 %v3126_v41, %v958_v55  ;;  %v1266_v44 = vld [vmem:[#allocation10 + $0xd8] sm:$0xff]  ;;  %v3198_v1 = vld [vmem:[#allocation9 + $0x120] sm:$0xff] }
 0x10c   : > { %v3167_v61 = vpop.eup %2187  ;;  %v1168_v58 = vadd.f32 %v944_v50, %v496_v56  ;;  %2195 = vlog2.f32 %v963_v45  ;;  %v552_v46 = vand.u32 2147483647, %v3153_v32  ;;  %v966_v25 = vmul.f32 -0.5, %v3156_v5 }
 0x10d   : > { %v2190_v10 = vpop.eup %2189  ;;  %1418 = vst [vmem:[#allocation2 + $0x58] sm:$0xff] %v1394_v62  ;;  %v1311_v6 = vmul.f32 %v1263_v17, %v1167_v0  ;;  %v972_v8 = vadd.f32 1.0, %v3167_v61  ;;  %v599_v7 = vsub.f32 0.0, %v551_v9  ;;  %v975_v38 = vmul.f32 -0.5, %v3167_v61 }
 0x10e   : > { %v1312_v35 = vmul.f32 %v1264_v15, %v1168_v58  ;;  %v947_v59 = vmul.f32 0.6931472, %v2190_v10  ;;  %2197 = vpow2.f32 %v677_v53  ;;  %vm3176_vm11 = vcmp.lt.f32.partialorder %v960_v13, 0.0004427343  ;;  %v3203_v53 = vld [vmem:[#allocation9 + $0x128] sm:$0xff] }
 0x10f   : > { %v2192_v56 = vpop.eup %2191  ;;  %v1359_v11 = vadd.f32 %v1311_v6, %v1215_v23  ;;  %v969_v4 = vand.u32 2147483647, %v3156_v5  ;;  %2199 = vlog2.f32 %v972_v8  ;;  %v600_v42 = vsub.f32 0.0, %v552_v46 }
 0x110   : > { %v1360_v48 = vadd.f32 %v1312_v35, %v1216_v37  ;;  %v953_v40 = vsel %vm3149_vm10, %v950_v29, %v947_v59  ;;  %v956_v43 = vmul.f32 0.6931472, %v2192_v56  ;;  %v967_v19 = vadd.f32 1.0, %v966_v25  ;;  %v1267_v59 = vld [vmem:[#allocation10 + $0xe0] sm:$0xff] }
 0x111   : > { %v1169_v12 = vadd.f32 %v953_v40, %v497_v39  ;;  %v978_v34 = vand.u32 2147483647, %v3167_v61  ;;  %v679_v63 = vmul.f32 1.442695, %v599_v7  ;;  %v976_v24 = vadd.f32 1.0, %v975_v38  ;;  %v1218_v39 = vld [vmem:[#allocation7 + $0xd8] sm:$0xff] }
 0x112   : > { %v1395_v3 = vpack.c.bf16 %v1360_v48, %v1359_v11  ;;  %v962_v16 = vsel %vm3176_vm11, %v959_v33, %v956_v43  ;;  %v681_v55 = vmul.f32 1.442695, %v600_v42  ;;  %v553_v51 = vand.u32 2147483647, %v3183_v52  ;;  %v1219_v42 = vld [vmem:[#allocation7 + $0xe0] sm:$0xff] }
 0x113   : > { %v1170_v49 = vadd.f32 %v962_v16, %v498_v54  ;;  %v1313_v36 = vmul.f32 %v1265_v14, %v1169_v12  ;;  %2201 = vpow2.f32 %v679_v63  ;;  %v503_v20 = vmax.f32 %v3146_v60, 0.0  ;;  %v1268_v12 = vld [vmem:[#allocation10 + $0xe8] sm:$0xff] }
 0x114   : > { %1419 = vst [vmem:[#allocation2 + $0x60] sm:$0xff] %v1395_v3  ;;  %v504_v13 = vmax.f32 %v3153_v32, 0.0  ;;  %2203 = vpow2.f32 %v681_v55  ;;  %v554_v9 = vand.u32 2147483647, %v3188_v28  ;;  %v3200_v17 = vpop.eup %2193  ;;  %v968_v54 = vmul.f32 %v3156_v5, %v967_v19  ;;  %v3294_v32 = vld [vmem:[#allocation9 + $0x150] sm:$0xff] }
 0x115   : > { %v1314_v29 = vmul.f32 %v1266_v44, %v1170_v49  ;;  %v1361_v21 = vadd.f32 %v1313_v36, %v1217_v22  ;;  %v601_v45 = vsub.f32 0.0, %v553_v51  ;;  %vm3205_vm12 = vcmp.lt.f32.partialorder %v969_v4, 0.0004427343  ;;  %v1220_v22 = vld [vmem:[#allocation7 + $0xe8] sm:$0xff] }
 0x116   : > { %v2196_v62 = vpop.eup %2195  ;;  %vm3209_vm13 = vcmp.lt.f32.partialorder %v978_v34, 0.0004427343  ;;  %v981_v15 = vadd.f32 1.0, %v3200_v17  ;;  %v602_v58 = vsub.f32 0.0, %v554_v9  ;;  %v977_v46 = vmul.f32 %v3167_v61, %v976_v24 }
 0x117   : > { %v1362_v23 = vadd.f32 %v1314_v29, %v1218_v39  ;;  %v965_v33 = vmul.f32 0.6931472, %v2196_v62  ;;  %v555_v5 = vand.u32 2147483647, %v3198_v1  ;;  %v984_v37 = vmul.f32 -0.5, %v3200_v17 }
 0x118   : > { %v2198_v10 = vpop.eup %2197  ;;  %2205 = vlog2.f32 %v981_v15  ;;  %v683_v6 = vmul.f32 1.442695, %v601_v45  ;;  %v556_v25 = vand.u32 2147483647, %v3203_v53  ;;  %v685_v56 = vmul.f32 1.442695, %v602_v58 }
 0x119   : > { %v2200_v8 = vpop.eup %2199  ;;  %v1396_v7 = vpack.c.bf16 %v1362_v23, %v1361_v21  ;;  %v971_v35 = vsel %vm3205_vm12, %v968_v54, %v965_v33  ;;  %v990_v38 = vadd.f32 1.0, %v2198_v10  ;;  %v993_v41 = vmul.f32 -0.5, %v2198_v10  ;;  %v3236_v58 = vld [vmem:[#allocation9 + $0x130] sm:$0xff] }
 0x11a   : > { %v974_v11 = vmul.f32 0.6931472, %v2200_v8  ;;  %v1171_v61 = vadd.f32 %v971_v35, %v499_v26  ;;  %v505_v4 = vmax.f32 %v3183_v52, 0.0  ;;  %v987_v48 = vand.u32 2147483647, %v3200_v17 }
 0x11b   : > { %1420 = vst [vmem:[#allocation2 + $0x68] sm:$0xff] %v1396_v7  ;;  %2207 = vlog2.f32 %v990_v38  ;;  %v506_v40 = vmax.f32 %v3188_v28, 0.0  ;;  %v603_v43 = vsub.f32 0.0, %v555_v5  ;;  %v604_v34 = vsub.f32 0.0, %v556_v25  ;;  %v3244_v5 = vld [vmem:[#allocation9 + $0x140] sm:$0xff] }
 0x11c   : > { %v980_v14 = vsel %vm3209_vm13, %v977_v46, %v974_v11  ;;  %v1315_v19 = vmul.f32 %v1267_v59, %v1171_v61  ;;  %2209 = vpow2.f32 %v683_v6  ;;  %v985_v63 = vadd.f32 1.0, %v984_v37  ;;  %v1269_v59 = vld [vmem:[#allocation10 + $0xf0] sm:$0xff]  ;;  %v1271_v46 = vld [vmem:[#allocation10 + $0x100] sm:$0xff] }
 0x11d   : > { %v2202_v27 = vpop.eup %2201  ;;  %v1172_v26 = vadd.f32 %v980_v14, %v500_v47  ;;  %v996_v3 = vand.u32 2147483647, %v2198_v10  ;;  %2211 = vpow2.f32 %v685_v56  ;;  %v994_v44 = vadd.f32 1.0, %v993_v41  ;;  %v1223_v6 = vld [vmem:[#allocation7 + $0x100] sm:$0xff] }
 0x11e   : > { %v2204_v16 = vpop.eup %2203  ;;  %v999_v24 = vadd.f32 1.0, %v2202_v27  ;;  %v1002_v55 = vmul.f32 -0.5, %v2202_v27  ;;  %v687_v49 = vmul.f32 1.442695, %v603_v43  ;;  %v1363_v51 = vadd.f32 %v1315_v19, %v1219_v42 }
 0x11f   : > { %v1316_v36 = vmul.f32 %v1268_v12, %v1172_v26  ;;  %v1005_v39 = vand.u32 2147483647, %v2202_v27  ;;  %v1008_v9 = vadd.f32 1.0, %v2204_v16  ;;  %v1011_v29 = vmul.f32 -0.5, %v2204_v16 }
 0x120   : > { %2213 = vlog2.f32 %v999_v24  ;;  %v1014_v21 = vand.u32 2147483647, %v2204_v16  ;;  %v689_v54 = vmul.f32 1.442695, %v604_v34  ;;  %v986_v57 = vmul.f32 %v3200_v17, %v985_v63  ;;  %v3242_v17 = vld [vmem:[#allocation9 + $0x138] sm:$0xff]  ;;  %v1221_v63 = vld [vmem:[#allocation7 + $0xf0] sm:$0xff] }
 0x121   : > { %v1364_v45 = vadd.f32 %v1316_v36, %v1220_v22  ;;  %v1003_v47 = vadd.f32 1.0, %v1002_v55  ;;  %2215 = vlog2.f32 %v1008_v9  ;;  %vm3230_vm14 = vcmp.lt.f32.partialorder %v987_v48, 0.0004427343  ;;  %v1222_v36 = vld [vmem:[#allocation7 + $0xf8] sm:$0xff] }
 0x122   : > { %v2206_v62 = vpop.eup %2205  ;;  %v507_v0 = vmax.f32 %v3198_v1, 0.0  ;;  %v508_v15 = vmax.f32 %v3203_v53, 0.0  ;;  %2217 = vpow2.f32 %v687_v49  ;;  %vm3238_vm15 = vcmp.lt.f32.partialorder %v996_v3, 0.0004427343  ;;  %v1270_v3 = vld [vmem:[#allocation10 + $0xf8] sm:$0xff] }
 0x123   : > { %v1397_v23 = vpack.c.bf16 %v1364_v45, %v1363_v51  ;;  %v983_v33 = vmul.f32 0.6931472, %v2206_v62  ;;  %2219 = vpow2.f32 %v689_v54  ;;  %v995_v37 = vmul.f32 %v2198_v10, %v994_v44 }
 0x124   : > { %vm3246_vm0 = vcmp.lt.f32.partialorder %v1005_v39, 0.0004427343  ;;  %v1012_v25 = vadd.f32 1.0, %v1011_v29  ;;  %vm3250_vm1 = vcmp.lt.f32.partialorder %v1014_v21, 0.0004427343  ;;  %v1004_v38 = vmul.f32 %v2202_v27, %v1003_v47  ;;  %v3263_v27 = vld [vmem:[#allocation9 + $0x148] sm:$0xff] }
 0x125   : > { %v2208_v7 = vpop.eup %2207  ;;  %1421 = vst [vmem:[#allocation2 + $0x70] sm:$0xff] %v1397_v23  ;;  %v989_v35 = vsel %vm3230_vm14, %v986_v57, %v983_v33  ;;  %v509_v56 = vmax.f32 %v3236_v58, 0.0  ;;  %v557_v10 = vand.u32 2147483647, %v3236_v58  ;;  %v558_v48 = vand.u32 2147483647, %v3242_v17 }
 0x126   : > { %v2210_v11 = vpop.eup %2209  ;;  %v992_v61 = vmul.f32 0.6931472, %v2208_v7  ;;  %v1173_v41 = vadd.f32 %v989_v35, %v501_v31  ;;  %v559_v43 = vand.u32 2147483647, %v3244_v5  ;;  %v510_v34 = vmax.f32 %v3242_v17, 0.0  ;;  %v1279_v17 = vld [vmem:[#allocation10 + $0x140] sm:$0xff] }
 0x127   : > { %v2212_v14 = vpop.eup %2211  ;;  %v1017_v42 = vadd.f32 1.0, %v2210_v11  ;;  %v1020_v12 = vmul.f32 -0.5, %v2210_v11  ;;  %v1023_v19 = vand.u32 2147483647, %v2210_v11  ;;  %v1013_v24 = vmul.f32 %v2204_v16, %v1012_v25 }
 0x128   : > { %v998_v26 = vsel %vm3238_vm15, %v995_v37, %v992_v61  ;;  %v1317_v22 = vmul.f32 %v1269_v59, %v1173_v41  ;;  %v1026_v2 = vadd.f32 1.0, %v2212_v14  ;;  %v1029_v31 = vmul.f32 -0.5, %v2212_v14  ;;  %v1272_v59 = vld [vmem:[#allocation10 + $0x108] sm:$0xff] }
 0x129   : > { %v1174_v44 = vadd.f32 %v998_v26, %v502_v30  ;;  %2221 = vlog2.f32 %v1017_v42  ;;  %v605_v55 = vsub.f32 0.0, %v557_v10  ;;  %v606_v51 = vsub.f32 0.0, %v558_v48 }
 0x12a   : > { %v2214_v49 = vpop.eup %2213  ;;  %2223 = vlog2.f32 %v1026_v2  ;;  %v560_v39 = vand.u32 2147483647, %v3263_v27  ;;  %v607_v9 = vsub.f32 0.0, %v559_v43  ;;  %v1365_v54 = vadd.f32 %v1317_v22, %v1221_v63  ;;  %v1224_v43 = vld [vmem:[#allocation7 + $0x108] sm:$0xff] }
 0x12b   : > { %v2216_v29 = vpop.eup %2215  ;;  %v1318_v21 = vmul.f32 %v1270_v3, %v1174_v44  ;;  %v1001_v45 = vmul.f32 0.6931472, %v2214_v49  ;;  %vm3270_vm2 = vcmp.lt.f32.partialorder %v1023_v19, 0.0004427343  ;;  %v1021_v16 = vadd.f32 1.0, %v1020_v12  ;;  %v3297_v3 = vld [vmem:[#allocation9 + $0x158] sm:$0xff] }
 0x12c   : > { %v3274_v18 = vpop.eup %2217  ;;  %v1010_v30 = vmul.f32 0.6931472, %v2216_v29  ;;  %v1030_v47 = vadd.f32 1.0, %v1029_v31  ;;  %v1032_v62 = vand.u32 2147483647, %v2212_v14  ;;  %v608_v63 = vsub.f32 0.0, %v560_v39 }
 0x12d   : > { %v3276_v50 = vpop.eup %2219  ;;  %v1366_v23 = vadd.f32 %v1318_v21, %v1222_v36  ;;  %v1007_v33 = vsel %vm3246_vm0, %v1004_v38, %v1001_v45  ;;  %v1035_v37 = vadd.f32 1.0, %v3274_v18  ;;  %v691_v25 = vmul.f32 1.442695, %v605_v55  ;;  %v1273_v21 = vld [vmem:[#allocation10 + $0x110] sm:$0xff] }
 0x12e   : > { %v1016_v7 = vsel %vm3250_vm1, %v1013_v24, %v1010_v30  ;;  %v1175_v35 = vadd.f32 %v1007_v33, %v503_v20  ;;  %v1044_v10 = vadd.f32 1.0, %v3276_v50  ;;  %v693_v61 = vmul.f32 1.442695, %v606_v51 }
 0x12f   : > { %v1398_v41 = vpack.c.bf16 %v1366_v23, %v1365_v54  ;;  %v1176_v48 = vadd.f32 %v1016_v7, %v504_v13  ;;  %2225 = vlog2.f32 %v1035_v37  ;;  %v1038_v38 = vmul.f32 -0.5, %v3274_v18  ;;  %v1225_v23 = vld [vmem:[#allocation7 + $0x110] sm:$0xff]  ;;  %v1226_v7 = vld [vmem:[#allocation7 + $0x118] sm:$0xff] }
 0x130   : > { %v1319_v42 = vmul.f32 %v1271_v46, %v1175_v35  ;;  %v1022_v12 = vmul.f32 %v2210_v11, %v1021_v16  ;;  %2227 = vlog2.f32 %v1044_v10  ;;  %v1047_v8 = vmul.f32 -0.5, %v3276_v50  ;;  %v1274_v16 = vld [vmem:[#allocation10 + $0x118] sm:$0xff]  ;;  %v3318_v10 = vld [vmem:[#allocation9 + $0x160] sm:$0xff] }
 0x131   : > { %1422 = vst [vmem:[#allocation2 + $0x78] sm:$0xff] %v1398_v41  ;;  %v1320_v60 = vmul.f32 %v1272_v59, %v1176_v48  ;;  %v1031_v20 = vmul.f32 %v2212_v14, %v1030_v47  ;;  %vm3290_vm3 = vcmp.lt.f32.partialorder %v1032_v62, 0.0004427343  ;;  %2229 = vpow2.f32 %v691_v25 }
 0x132   : > { %v1367_v13 = vadd.f32 %v1319_v42, %v1223_v6  ;;  %v1041_v26 = vand.u32 2147483647, %v3274_v18  ;;  %2231 = vpow2.f32 %v693_v61  ;;  %v1039_v2 = vadd.f32 1.0, %v1038_v38 }
 0x133   : > { %v2222_v11 = vpop.eup %2221  ;;  %v1368_v22 = vadd.f32 %v1320_v60, %v1224_v43  ;;  %v1048_v31 = vadd.f32 1.0, %v1047_v8  ;;  %v695_v44 = vmul.f32 1.442695, %v607_v9  ;;  %v697_v55 = vmul.f32 1.442695, %v608_v63  ;;  %v3327_v60 = vld [vmem:[#allocation9 + $0x168] sm:$0xff] }
 0x134   : > { %v2224_v14 = vpop.eup %2223  ;;  %v1019_v24 = vmul.f32 0.6931472, %v2222_v11  ;;  %v561_v49 = vand.u32 2147483647, %v3294_v32  ;;  %v562_v29 = vand.u32 2147483647, %v3297_v3  ;;  %v1040_v33 = vmul.f32 %v3274_v18, %v1039_v2 }
 0x135   : > { %v1399_v36 = vpack.c.bf16 %v1368_v22, %v1367_v13  ;;  %v1028_v51 = vmul.f32 0.6931472, %v2224_v14  ;;  %2233 = vpow2.f32 %v695_v44  ;;  %v1050_v54 = vand.u32 2147483647, %v3276_v50  ;;  %v1280_v18 = vld [vmem:[#allocation10 + $0x148] sm:$0xff] }
 0x136   : > { %v1025_v39 = vsel %vm3270_vm2, %v1022_v12, %v1019_v24  ;;  %2235 = vpow2.f32 %v697_v55  ;;  %v609_v45 = vsub.f32 0.0, %v561_v49  ;;  %v511_v47 = vmax.f32 %v3244_v5, 0.0  ;;  %v1275_v12 = vld [vmem:[#allocation10 + $0x120] sm:$0xff]  ;;  %v1228_v24 = vld [vmem:[#allocation7 + $0x128] sm:$0xff] }
 0x137   : > { %1423 = vst [vmem:[#allocation2 + $0x80] sm:$0xff] %v1399_v36  ;;  %v1034_v9 = vsel %vm3290_vm3, %v1031_v20, %v1028_v51  ;;  %v1177_v30 = vadd.f32 %v1025_v39, %v505_v4  ;;  %v610_v62 = vsub.f32 0.0, %v562_v29  ;;  %v512_v46 = vmax.f32 %v3263_v27, 0.0 }
 0x138   : > { %v1178_v57 = vadd.f32 %v1034_v9, %v506_v40  ;;  %v699_v37 = vmul.f32 1.442695, %v609_v45  ;;  %vm3313_vm4 = vcmp.lt.f32.partialorder %v1041_v26, 0.0004427343  ;;  %v1049_v52 = vmul.f32 %v3276_v50, %v1048_v31  ;;  %v1276_v26 = vld [vmem:[#allocation10 + $0x128] sm:$0xff]  ;;  %v1227_v31 = vld [vmem:[#allocation7 + $0x120] sm:$0xff] }
 0x139   : > { %v2226_v25 = vpop.eup %2225  ;;  %v1321_v35 = vmul.f32 %v1273_v21, %v1177_v30  ;;  %v701_v4 = vmul.f32 1.442695, %v610_v62  ;;  %vm3320_vm5 = vcmp.lt.f32.partialorder %v1050_v54, 0.0004427343  ;;  %v513_v38 = vmax.f32 %v3294_v32, 0.0 }
 0x13a   : > { %v2228_v28 = vpop.eup %2227  ;;  %v1322_v40 = vmul.f32 %v1274_v16, %v1178_v57  ;;  %v1037_v61 = vmul.f32 0.6931472, %v2226_v25  ;;  %2237 = vpow2.f32 %v699_v37  ;;  %v563_v20 = vand.u32 2147483647, %v3318_v10 }
 0x13b   : > { %v2230_v41 = vpop.eup %2229  ;;  %v1369_v48 = vadd.f32 %v1321_v35, %v1225_v23  ;;  %v1046_v6 = vmul.f32 0.6931472, %v2228_v28  ;;  %2239 = vpow2.f32 %v701_v4  ;;  %v514_v44 = vmax.f32 %v3297_v3, 0.0 }
 0x13c   : > { %v2232_v43 = vpop.eup %2231  ;;  %v1370_v42 = vadd.f32 %v1322_v40, %v1226_v7  ;;  %v1043_v50 = vsel %vm3313_vm4, %v1040_v33, %v1037_v61  ;;  %v1053_v8 = vadd.f32 1.0, %v2230_v41  ;;  %v1056_v63 = vmul.f32 -0.5, %v2230_v41 }
 0x13d   : > { %v1052_v19 = vsel %vm3320_vm5, %v1049_v52, %v1046_v6  ;;  %v1179_v13 = vadd.f32 %v1043_v50, %v507_v0  ;;  %v1062_v11 = vadd.f32 1.0, %v2232_v43  ;;  %v1065_v49 = vmul.f32 -0.5, %v2232_v43  ;;  %v3349_v6 = vld [vmem:[#allocation9 + $0x170] sm:$0xff] }
 0x13e   : > { %v1400_v22 = vpack.c.bf16 %v1370_v42, %v1369_v48  ;;  %v1180_v2 = vadd.f32 %v1052_v19, %v508_v15  ;;  %2241 = vlog2.f32 %v1053_v8  ;;  %v564_v36 = vand.u32 2147483647, %v3327_v60 }
 0x13f   : > { %v2234_v14 = vpop.eup %2233  ;;  %v1323_v55 = vmul.f32 %v1275_v12, %v1179_v13  ;;  %2243 = vlog2.f32 %v1062_v11  ;;  %v1059_v51 = vand.u32 2147483647, %v2230_v41  ;;  %v611_v39 = vsub.f32 0.0, %v563_v20  ;;  %v3365_v13 = vld [vmem:[#allocation9 + $0x178] sm:$0xff]  ;;  %v1277_v11 = vld [vmem:[#allocation10 + $0x130] sm:$0xff] }
 0x140   : > { %v2236_v1 = vpop.eup %2235  ;;  %1424 = vst [vmem:[#allocation2 + $0x88] sm:$0xff] %v1400_v22  ;;  %v1324_v0 = vmul.f32 %v1276_v26, %v1180_v2  ;;  %v1071_v29 = vadd.f32 1.0, %v2234_v14  ;;  %v1057_v53 = vadd.f32 1.0, %v1056_v63  ;;  %v1068_v15 = vand.u32 2147483647, %v2232_v43 }
 0x141   : > { %v1371_v21 = vadd.f32 %v1323_v55, %v1227_v31  ;;  %v1074_v54 = vmul.f32 -0.5, %v2234_v14  ;;  %v1066_v9 = vadd.f32 1.0, %v1065_v49  ;;  %v1080_v30 = vadd.f32 1.0, %v2236_v1 }
 0x142   : > { %v1372_v45 = vadd.f32 %v1324_v0, %v1228_v24  ;;  %2245 = vlog2.f32 %v1071_v29  ;;  %v1077_v62 = vand.u32 2147483647, %v2234_v14  ;;  %v1083_v57 = vmul.f32 -0.5, %v2236_v1 }
 0x143   : > { %v1075_v16 = vadd.f32 1.0, %v1074_v54  ;;  %v612_v23 = vsub.f32 0.0, %v564_v36  ;;  %vm3338_vm6 = vcmp.lt.f32.partialorder %v1059_v51, 0.0004427343  ;;  %2247 = vlog2.f32 %v1080_v30  ;;  %v1229_v54 = vld [vmem:[#allocation7 + $0x130] sm:$0xff] }
 0x144   : > { %v2238_v33 = vpop.eup %2237  ;;  %v1401_v37 = vpack.c.bf16 %v1372_v45, %v1371_v21  ;;  %v1086_v7 = vand.u32 2147483647, %v2236_v1  ;;  %v1084_v59 = vadd.f32 1.0, %v1083_v57  ;;  %v703_v28 = vmul.f32 1.442695, %v611_v39  ;;  %v1278_v39 = vld [vmem:[#allocation10 + $0x138] sm:$0xff] }
 0x145   : > { %v3342_v35 = vpop.eup %2239  ;;  %v1089_v52 = vadd.f32 1.0, %v2238_v33  ;;  %v1092_v4 = vmul.f32 -0.5, %v2238_v33  ;;  %v1058_v40 = vmul.f32 %v2230_v41, %v1057_v53  ;;  %v1067_v61 = vmul.f32 %v2232_v43, %v1066_v9  ;;  %v3358_v41 = vld [vmem:[%s3513_s5] sm:$0x1] }
 0x146   : > { %1425 = vst [vmem:[#allocation2 + $0x90] sm:$0xff] %v1401_v37  ;;  %vm3344_vm7 = vcmp.lt.f32.partialorder %v1068_v15, 0.0004427343  ;;  %v1098_v48 = vadd.f32 1.0, %v3342_v35  ;;  %v1076_v42 = vmul.f32 %v2234_v14, %v1075_v16  ;;  %vm3351_vm8 = vcmp.lt.f32.partialorder %v1077_v62, 0.0004427343 }
 0x147   : > { %2249 = vlog2.f32 %v1089_v52  ;;  %v1095_v12 = vand.u32 2147483647, %v2238_v33  ;;  %vm3360_vm9 = vcmp.lt.f32.partialorder %v1086_v7, 0.0004427343  ;;  %v1101_v20 = vmul.f32 -0.5, %v3342_v35  ;;  %v1230_v62 = vld [vmem:[#allocation7 + $0x138] sm:$0xff] }
 0x148   : > { %v2242_v43 = vpop.eup %2241  ;;  %2251 = vlog2.f32 %v1098_v48  ;;  %v705_v19 = vmul.f32 1.442695, %v612_v23  ;;  %v1085_v22 = vmul.f32 %v2236_v1, %v1084_v59  ;;  %v1093_v2 = vadd.f32 1.0, %v1092_v4 }
 0x149   : > { %v2244_v26 = vpop.eup %2243  ;;  %v1055_v63 = vmul.f32 0.6931472, %v2242_v43  ;;  %2253 = vpow2.f32 %v703_v28  ;;  %v1104_v14 = vand.u32 2147483647, %v3342_v35  ;;  %v565_v24 = vand.u32 2147483647, %v3349_v6 }
 0x14a   : > { %v1064_v31 = vmul.f32 0.6931472, %v2244_v26  ;;  %2255 = vpow2.f32 %v705_v19  ;;  %vm3371_vm10 = vcmp.lt.f32.partialorder %v1095_v12, 0.0004427343  ;;  %v566_v36 = vand.u32 2147483647, %v3365_v13 }
 0x14b   : > { %v1061_v55 = vsel %vm3338_vm6, %v1058_v40, %v1055_v63  ;;  %v1435_v0 = vand.u32 2147483647, %v3358_v41  ;;  %v1102_v21 = vadd.f32 1.0, %v1101_v20  ;;  %v613_v53 = vsub.f32 0.0, %v565_v24  ;;  %v1232_v20 = vld [vmem:[#allocation7 + $0x148] sm:$0xff]  ;;  %v1233_v24 = vld [vmem:[#allocation7 + $0x150] sm:$0xff] }
 0x14c   : > { %v2246_v1 = vpop.eup %2245  ;;  %v1070_v51 = vsel %vm3344_vm7, %v1067_v61, %v1064_v31  ;;  %v1181_v29 = vadd.f32 %v1061_v55, %v509_v56  ;;  %v614_v9 = vsub.f32 0.0, %v566_v36  ;;  %v1094_v23 = vmul.f32 %v2238_v33, %v1093_v2  ;;  %v1231_v61 = vld [vmem:[#allocation7 + $0x140] sm:$0xff]  ;;  %v1282_v2 = vld [vmem:[#allocation10 + $0x158] sm:$0xff] }
 0x14d   : > { %v1182_v15 = vadd.f32 %v1070_v51, %v510_v34  ;;  %v1073_v45 = vmul.f32 0.6931472, %v2246_v1  ;;  %v1436_v30 = vsub.f32 0.0, %v1435_v0  ;;  %v2248_v16 = vpop.eup %2247  ;;  %vm3383_vm11 = vcmp.lt.f32.partialorder %v1104_v14, 0.0004427343  ;;  %v1234_v36 = vld [vmem:[#allocation7 + $0x158] sm:$0xff] }
 0x14e   : > { %v1325_v57 = vmul.f32 %v1277_v11, %v1181_v29  ;;  %v707_v58 = vmul.f32 1.442695, %v613_v53  ;;  %v1082_v7 = vmul.f32 0.6931472, %v2248_v16  ;;  %v709_v34 = vmul.f32 1.442695, %v614_v9 }
 0x14f   : > { %v1326_v56 = vmul.f32 %v1278_v39, %v1182_v15  ;;  %v1079_v25 = vsel %vm3351_vm8, %v1076_v42, %v1073_v45  ;;  %v1437_v4 = vmul.f32 1.442695, %v1436_v30  ;;  %v1103_v48 = vmul.f32 %v3342_v35, %v1102_v21 }
 0x150   : > { %v1373_v59 = vadd.f32 %v1325_v57, %v1229_v54  ;;  %v1183_v52 = vadd.f32 %v1079_v25, %v511_v47  ;;  %2257 = vpow2.f32 %v707_v58  ;;  %v1088_v40 = vsel %vm3360_vm9, %v1085_v22, %v1082_v7  ;;  %v1281_v22 = vld [vmem:[#allocation10 + $0x150] sm:$0xff] }
 0x151   : > { %v2250_v28 = vpop.eup %2249  ;;  %v1374_v33 = vadd.f32 %v1326_v56, %v1230_v62  ;;  %2259 = vpow2.f32 %v709_v34  ;;  %v1184_v50 = vadd.f32 %v1088_v40, %v512_v46  ;;  %v515_v58 = vmax.f32 %v3318_v10, 0.0  ;;  %v1284_v10 = vld [vmem:[#allocation10 + $0x168] sm:$0xff] }
 0x152   : > { %v2252_v42 = vpop.eup %2251  ;;  %v1327_v12 = vmul.f32 %v1279_v17, %v1183_v52  ;;  %v1091_v43 = vmul.f32 0.6931472, %v2250_v28  ;;  %2261 = vpow2.f32 %v1437_v4  ;;  %v516_v34 = vmax.f32 %v3327_v60, 0.0 }
 0x153   : > { %v2254_v5 = vpop.eup %2253  ;;  %v1402_v47 = vpack.c.bf16 %v1374_v33, %v1373_v59  ;;  %v1100_v19 = vmul.f32 0.6931472, %v2252_v42  ;;  %v1328_v63 = vmul.f32 %v1280_v18, %v1184_v50  ;;  %v1283_v33 = vld [vmem:[#allocation10 + $0x160] sm:$0xff] }
 0x154   : > { %v2256_v26 = vpop.eup %2255  ;;  %v1375_v8 = vadd.f32 %v1327_v12, %v1231_v61  ;;  %v1097_v11 = vsel %vm3371_vm10, %v1094_v23, %v1091_v43  ;;  %v1107_v35 = vadd.f32 1.0, %v2254_v5  ;;  %v1110_v0 = vmul.f32 -0.5, %v2254_v5  ;;  %v1235_v50 = vld [vmem:[#allocation7 + $0x160] sm:$0xff] }
 0x155   : > { %1426 = vst [vmem:[#allocation2 + $0x98] sm:$0xff] %v1402_v47  ;;  %v1106_v27 = vsel %vm3383_vm11, %v1103_v48, %v1100_v19  ;;  %v1185_v46 = vadd.f32 %v1097_v11, %v513_v38  ;;  %v1376_v31 = vadd.f32 %v1328_v63, %v1232_v20  ;;  %v1116_v55 = vadd.f32 1.0, %v2256_v26  ;;  %v1236_v19 = vld [vmem:[#allocation7 + $0x168] sm:$0xff] }
 0x156   : > { %v1186_v14 = vadd.f32 %v1106_v27, %v514_v44  ;;  %2263 = vlog2.f32 %v1107_v35  ;;  %v1119_v39 = vmul.f32 -0.5, %v2256_v26  ;;  %v1111_v53 = vadd.f32 1.0, %v1110_v0 }
 0x157   : > { %v1329_v49 = vmul.f32 %v1281_v22, %v1185_v46  ;;  %v1403_v1 = vpack.c.bf16 %v1376_v31, %v1375_v8  ;;  %2265 = vlog2.f32 %v1116_v55  ;;  %v1113_v44 = vand.u32 2147483647, %v2254_v5  ;;  %v1285_v55 = vld [vmem:[#allocation10 + $0x170] sm:$0xff] }
 0x158   : > { %v1330_v51 = vmul.f32 %v1282_v2, %v1186_v14  ;;  %v1120_v9 = vadd.f32 1.0, %v1119_v39  ;;  %v1122_v16 = vand.u32 2147483647, %v2256_v26  ;;  %v1112_v57 = vmul.f32 %v2254_v5, %v1111_v53  ;;  %v1237_v39 = vld [vmem:[#allocation7 + $0x170] sm:$0xff] }
 0x159   : > { %v1377_v29 = vadd.f32 %v1329_v49, %v1233_v24  ;;  %1427 = vst [vmem:[#allocation2 + $0xa0] sm:$0xff] %v1403_v1  ;;  %vm1114_vm12 = vcmp.lt.f32.partialorder %v1113_v44, 0.0004427343  ;;  %v517_v47 = vmax.f32 %v3349_v6, 0.0  ;;  %v1434_v14 = vmax.f32 %v3358_v41, 0.0  ;;  %v1286_v1 = vld [vmem:[#allocation10 + $0x178] sm:$0xff] }
 0x15a   : > { %v2258_v21 = vpop.eup %2257  ;;  %v1378_v32 = vadd.f32 %v1330_v51, %v1234_v36  ;;  %v1121_v7 = vmul.f32 %v2256_v26, %v1120_v9  ;;  %vm1123_vm13 = vcmp.lt.f32.partialorder %v1122_v16, 0.0004427343  ;;  %v518_v26 = vmax.f32 %v3365_v13, 0.0 }
 0x15b   : > { %v2260_v38 = vpop.eup %2259  ;;  %v1125_v15 = vadd.f32 1.0, %v2258_v21  ;;  %v1128_v62 = vmul.f32 -0.5, %v2258_v21  ;;  %v1131_v52 = vand.u32 2147483647, %v2258_v21 }
 0x15c   : > { %v2262_v54 = vpop.eup %2261  ;;  %v1404_v3 = vpack.c.bf16 %v1378_v32, %v1377_v29  ;;  %v1134_v45 = vadd.f32 1.0, %v2260_v38  ;;  %v1137_v23 = vmul.f32 -0.5, %v2260_v38  ;;  %v1140_v61 = vand.u32 2147483647, %v2260_v38  ;;  %v1238_v32 = vld [vmem:[#allocation7 + $0x178] sm:$0xff] }
 0x15d   : > { %2267 = vlog2.f32 %v1125_v15  ;;  %v1439_v30 = vadd.f32 1.0, %v2262_v54  ;;  %v1442_v56 = vmul.f32 -0.5, %v2262_v54  ;;  %v1129_v59 = vadd.f32 1.0, %v1128_v62 }
 0x15e   : > { %1428 = vst [vmem:[#allocation2 + $0xa8] sm:$0xff] %v1404_v3  ;;  %2269 = vlog2.f32 %v1134_v45  ;;  %v1138_v40 = vadd.f32 1.0, %v1137_v23  ;;  %v1445_v12 = vand.u32 2147483647, %v2262_v54  ;;  %vm3408_vm14 = vcmp.lt.f32.partialorder %v1131_v52, 0.0004427343 }
 0x15f   : > { %2271 = vlog2.f32 %v1439_v30  ;;  %v1443_v48 = vadd.f32 1.0, %v1442_v56  ;;  %v1130_v20 = vmul.f32 %v2258_v21, %v1129_v59  ;;  %vm3412_vm15 = vcmp.lt.f32.partialorder %v1140_v61, 0.0004427343  ;;  %v1432_v21 = vld [vmem:[%s3514_s6] sm:$0x1] }
 0x160   : > { %v2264_v37 = vpop.eup %2263  ;;  %v1139_v8 = vmul.f32 %v2260_v38, %v1138_v40  ;;  %vm1446_vm0 = vcmp.lt.f32.partialorder %v1445_v12, 0.0004427343 }
 0x161   : > { %v1109_v25 = vmul.f32 0.6931472, %v2264_v37  ;;  %v2266_v17 = vpop.eup %2265  ;;  %v1444_v2 = vmul.f32 %v2262_v54, %v1443_v48  ;;  %v1431_v54 = vld [vmem:[%s3634_s24] sm:$0x1] }
 0x162   : > { %v1118_v28 = vmul.f32 0.6931472, %v2266_v17 }
 0x163   : > { %v1115_v4 = vsel %vm1114_vm12, %v1112_v57, %v1109_v25 }
 0x164   : > { %v1187_v18 = vadd.f32 %v1115_v4, %v515_v58  ;;  %v1124_v42 = vsel %vm1123_vm13, %v1121_v7, %v1118_v28 }
 0x165   : > { %v1188_v43 = vadd.f32 %v1124_v42, %v516_v34 }
 0x166   : > { %v1331_v5 = vmul.f32 %v1283_v33, %v1187_v18 }
 0x167   : > { %v2268_v60 = vpop.eup %2267  ;;  %v1332_v35 = vmul.f32 %v1284_v10, %v1188_v43 }
 0x168   : > { %v2270_v22 = vpop.eup %2269  ;;  %v1379_v27 = vadd.f32 %v1331_v5, %v1235_v50  ;;  %v1127_v46 = vmul.f32 0.6931472, %v2268_v60 }
 0x169   : > { %v2272_v6 = vpop.eup %2271  ;;  %v1136_v31 = vmul.f32 0.6931472, %v2270_v22  ;;  %v1380_v13 = vadd.f32 %v1332_v35, %v1236_v19 }
 0x16a   : > { %v1133_v24 = vsel %vm3408_vm14, %v1130_v20, %v1127_v46  ;;  %v1441_v36 = vmul.f32 0.6931472, %v2272_v6 }
 0x16b   : > { %v1142_v49 = vsel %vm3412_vm15, %v1139_v8, %v1136_v31  ;;  %v1189_v0 = vadd.f32 %v1133_v24, %v517_v47  ;;  %v1405_v51 = vpack.c.bf16 %v1380_v13, %v1379_v27 }
 0x16c   : > { %v1190_v29 = vadd.f32 %v1142_v49, %v518_v26  ;;  %v1447_v41 = vsel %vm1446_vm0, %v1444_v2, %v1441_v36 }
 0x16d   : > { %v1333_v38 = vmul.f32 %v1285_v55, %v1189_v0  ;;  %v1448_v53 = vadd.f32 %v1447_v41, %v1434_v14  ;;  %1429 = vst [vmem:[#allocation2 + $0xb0] sm:$0xff] %v1405_v51 }
 0x16e   : > { %v1334_v15 = vmul.f32 %v1286_v1, %v1190_v29 }
 0x16f   : > { %v1381_v3 = vadd.f32 %v1333_v38, %v1237_v39  ;;  %v1449_v44 = vmul.f32 %v1448_v53, %v1432_v21 }
 0x170   : > { %v1382_v45 = vadd.f32 %v1334_v15, %v1238_v32 }
 0x171   : > { %v1450_v9 = vadd.f32 %v1449_v44, %v1431_v54 }
 0x172   : > { %v1406_v30 = vpack.c.bf16 %v1382_v45, %v1381_v3 }
 0x173   : > { %1451 = vst [vmem:[#allocation3] sm:$0x1] %v1450_v9 }
 0x174   : > { %1430 = vst [vmem:[#allocation2 + $0xb8] sm:$0xff] %v1406_v30 }
 0x175 PF: > { %v1459_v16 = vld [vmem:[#allocation2] sm:$0xff]  ;;  %v1460_v62 = vld [vmem:[#allocation2 + $0x8] sm:$0xff]  ;;  %v1461_v23 = vld [vmem:[#allocation2 + $0x10] sm:$0xff]  ;;  %vm1477_vm1 = vsmask.f32 7424  ;;  %vm1610_vm2 = vcmask 1046528  }
 0x176   : > { %1929 = vmatprep.subr.bf16.mxu0 %v1459_v16  ;;  %v1469_v57 = vld [vmem:[#allocation2 + $0x40] sm:$0xff]  ;;  %v1453_v58 = vld [vmem:[%s2751_s19 + $0x8] sm:$0xff]  ;;  %s1878_s20 = sshll.u32 %s2469_s27, 9  ;;  %s1701_s15 = sshll.u32 %s2766_s23, 4  ;;  %s3456_s15 = int_to_ptr.vmem [resolvable:$true] %s1701_s15 }
 0x177   : > { %1930 = vmatpush3.bf16.msra.mxu0 %v1459_v16  ;;  %1909 = vmatprep.subr.bf16.mxu1 %v1469_v57  ;;  %v1452_v37 = vld [vmem:[%s2751_s19] sm:$0xff]  ;;  %v1454_v7 = vld [vmem:[%s2751_s19 + $0x10] sm:$0xff]  ;;  %v1455_v17 = vld [vmem:[%s2751_s19 + $0x18] sm:$0xff]  ;;  %s3635_s30 = sld [smem:[#allocation20_spill]]  ;;  %s1687_s27 = scalar_lea.sflag [#allocation6], %s2747_s14 }
 0x178   : > { %1931 = vmatprep.subr.bf16.mxu0 %v1460_v62  ;;  %1910 = vmatpush3.bf16.msra.mxu1 %v1469_v57  ;;  %v3429_v56 = vpack.c.bf16 %v1453_v58, %v1452_v37  ;;  %v1470_v25 = vld [vmem:[#allocation2 + $0x48] sm:$0xff]  ;;  %v3433_v34 = vpack.c.bf16 %v1455_v17, %v1454_v7  ;;  %v1471_v59 = vld [vmem:[#allocation2 + $0x50] sm:$0xff]  ;;  %v1462_v33 = vld [vmem:[#allocation2 + $0x18] sm:$0xff]  ;;  %s2485_s13 = smov [#allocation12]  }
 0x179   : > { %1911 = vmatprep.subr.bf16.mxu1 %v1470_v25  ;;  %v1472_v18 = vld [vmem:[#allocation2 + $0x58] sm:$0xff]  ;;  %v1463_v42 = vld [vmem:[#allocation2 + $0x20] sm:$0xff]  ;;  %v1464_v12 = vld [vmem:[#allocation2 + $0x28] sm:$0xff]  ;;  %s2391_s9 = sshll.u32 %s2485_s13, 4  ;;  %s2392_s9 = int_to_ptr.vmem [resolvable:$false] %s2391_s9 }
 0x17a   : > { %1945 = vmatprep.mubr.bf16.mxu0 %v3429_v56  ;;  %v1479_v52 = vshrl.u32 %v3429_v56, 16  ;;  %v1481_v4 = vshll.u32 %v3429_v56, 16  ;;  %v1486_v28 = vshll.u32 %v3433_v34, 16  ;;  %v1473_v10 = vld [vmem:[#allocation2 + $0x60] sm:$0xff]  ;;  %v1474_v5 = vld [vmem:[#allocation2 + $0x68] sm:$0xff]  ;;  %v1465_v47 = vld [vmem:[#allocation2 + $0x30] sm:$0xff]  ;;  %p2394_p7 = scmp.lt.s32.totalorder %s3456_s15, %s2392_s9 }
 0x17b   : > { %1932 = vmatpush3.bf16.msra.mxu0 %v1460_v62  ;;  %v1456_v43 = vld [vmem:[%s2751_s19 + $0x20] sm:$0xff]  ;;  %v1466_v19 = vld [vmem:[#allocation2 + $0x38] sm:$0xff]  ;;  %v1490_v26 = vshrl.u32 %v3433_v34, 16  ;;  %v1611_v11 = vrot.slane %v3429_v56, 1  ;;  %v1612_v22 = vrot.slane %v3433_v34, 1  ;;  %s2387_s19 = scalar_lea.vmem %s3456_s15, 512 }
 0x17c   : > { %1933 = vmatprep.subr.bf16.mxu0 %v1461_v23  ;;  %1912 = vmatpush3.bf16.msra.mxu1 %v1470_v25  ;;  %v1483_v40 = vrot.slane %v1481_v4, 1  ;;  %v1488_v61 = vrot.slane %v1486_v28, 1  ;;  %v1467_v20 = vpack.c.bf16 %v1456_v43, %v1456_v43  ;;  %v1475_v60 = vld [vmem:[#allocation2 + $0x70] sm:$0xff]  ;;  %v1476_v8 = vld [vmem:[#allocation2 + $0x78] sm:$0xff]  ;;  %v1599_v35 = vld [vmem:[#allocation2 + $0x80] sm:$0xff]  ;;  %p2388_p6 = scmp.ne.s32.totalorder %s3456_s15, %s2387_s19  ;;  %s2393_s11 = scalar_lea.vmem %s2392_s9, 1024 }
 0x17d   : > { %1913 = vmatprep.subr.bf16.mxu1 %v1471_v59  ;;  %v1613_v2 = vsel %vm1610_vm2, %v1611_v11, %v1612_v22  ;;  %v1600_v6 = vld [vmem:[#allocation2 + $0x88] sm:$0xff]  ;;  %v1601_v14 = vld [vmem:[#allocation2 + $0x90] sm:$0xff]  ;;  %v1602_v13 = vld [vmem:[#allocation2 + $0x98] sm:$0xff]  ;;  %s3454_s17 = scalar_lea.hbm %s3635_s30, %s1878_s20  ;;  %p2395_p9 = scmp.lt.s32.totalorder %s2393_s11, %s2387_s19 }
 0x17e   : > { %v1484_v48 = vor.u32 %v1483_v40, %v1479_v52  ;;  %v1494_v63 = vshll.u32 %v1467_v20, 16  ;;  %v1492_v27 = vor.u32 %v1490_v26, %v1488_v61  ;;  %v1603_v24 = vld [vmem:[#allocation2 + $0xa0] sm:$0xff]  ;;  %v1604_v55 = vld [vmem:[#allocation2 + $0xa8] sm:$0xff]  ;;  %v1605_v36 = vld [vmem:[#allocation2 + $0xb0] sm:$0xff]  ;;  %v1614_v0 = vrot.slane %v1467_v20, 1  ;;  %p2389_p3 = pnand %p2388_p6, %p2688_p10 }
 0x17f   : > { %1934 = vmatpush3.bf16.msra.mxu0 %v1461_v23  ;;  %v1606_v49 = vld [vmem:[#allocation2 + $0xb8] sm:$0xff]  ;;  %v1872_v32 = vld [vmem:[#allocation3] ss:$0 sm:$0xff]  ;;  %p2396_p0 = por %p2395_p9, %p2394_p7 }
 0x180   : > { %1935 = vmatprep.subr.bf16.mxu0 %v1462_v33  ;;  %1914 = vmatpush3.bf16.msra.mxu1 %v1471_v59  ;;  %v1489_v50 = vsel %vm1477_vm1, %v1484_v48, %v1488_v61  ;;  %v1496_v46 = vrot.slane %v1494_v63, 1  ;;  %v1615_v1 = vsel %vm1610_vm2, %v1612_v22, %v1614_v0  ;;  %p2390_p5 = pneg %p2389_p3 }
 0x181   : > { %1915 = vmatprep.subr.bf16.mxu1 %v1472_v18  ;;  %1925 = vmatprep.mubr.bf16.mxu1 %v1489_v50 }
 0x182   : > { %v1497_v31 = vsel %vm1477_vm1, %v1492_v27, %v1496_v46  ;;  %p2397_p4 = pnand %p2396_p0, %p2390_p5 }
 0x183   : > { %1936 = vmatpush3.bf16.msra.mxu0 %v1462_v33 }
 0x184   : > { %1937 = vmatprep.subr.bf16.mxu0 %v1463_v42  ;;  %1916 = vmatpush3.bf16.msra.mxu1 %v1472_v18 }
 0x185   : > { %1917 = vmatprep.subr.bf16.mxu1 %v1473_v10 }
 0x187   : > { %1938 = vmatpush3.bf16.msra.mxu0 %v1463_v42 }
 0x188   : > { %1939 = vmatprep.subr.bf16.mxu0 %v1464_v12  ;;  %1918 = vmatpush3.bf16.msra.mxu1 %v1473_v10 }
 0x189   : > { %1919 = vmatprep.subr.bf16.mxu1 %v1474_v5 }
 0x18b   : > { %1940 = vmatpush3.bf16.msra.mxu0 %v1464_v12 }
 0x18c   : > { %1941 = vmatprep.subr.bf16.mxu0 %v1465_v47  ;;  %1920 = vmatpush3.bf16.msra.mxu1 %v1474_v5 }
 0x18d   : > { %1921 = vmatprep.subr.bf16.mxu1 %v1475_v60 }
 0x18f   : > { %1942 = vmatpush3.bf16.msra.mxu0 %v1465_v47 }
 0x190   : > { %1943 = vmatprep.subr.bf16.mxu0 %v1466_v19  ;;  %1922 = vmatpush3.bf16.msra.mxu1 %v1475_v60 }
 0x191   : > { %1923 = vmatprep.subr.bf16.mxu1 %v1476_v8 }
 0x193   : > { %1944 = vmatpush3.bf16.msra.mxu0 %v1466_v19 }
 0x194   : > { %1949 = vmatprep.subr.bf16.mxu0 %v1599_v35  ;;  %1924 = vmatpush3.bf16.msra.mxu1 %v1476_v8 }
 0x196   : > { %1946 = vmatmul.mubr.bf16.vlgmr.msra.gmra.mrb[0].mxu0 %v3433_v34 }
 0x197   : > { %1950 = vmatpush3.bf16.msra.mxu0 %v1599_v35  ;;  %1965 = vmatprep.mubr.bf16.mxu0 %v1613_v2 }
 0x198   : > { %1951 = vmatprep.subr.bf16.mxu0 %v1600_v6  ;;  %1926 = vmatmul.mubr.bf16.vlgmr.msra.gmra.mrb[0].mxu1 %v1497_v31 }
 0x19b   : > { %1952 = vmatpush3.bf16.msra.mxu0 %v1600_v6 }
 0x19c   : > { %1953 = vmatprep.subr.bf16.mxu0 %v1601_v14 }
 0x19f   : > { %1954 = vmatpush3.bf16.msra.mxu0 %v1601_v14 }
 0x1a0   : > { %1955 = vmatprep.subr.bf16.mxu0 %v1602_v13 }
 0x1a3   : > { %1956 = vmatpush3.bf16.msra.mxu0 %v1602_v13 }
 0x1a4   : > { %1957 = vmatprep.subr.bf16.mxu0 %v1603_v24 }
 0x1a7   : > { %1958 = vmatpush3.bf16.msra.mxu0 %v1603_v24 }
 0x1a8   : > { %1959 = vmatprep.subr.bf16.mxu0 %v1604_v55 }
 0x1ab   : > { %1960 = vmatpush3.bf16.msra.mxu0 %v1604_v55 }
 0x1ac   : > { %1961 = vmatprep.subr.bf16.mxu0 %v1605_v36 }
 0x1af   : > { %1962 = vmatpush3.bf16.msra.mxu0 %v1605_v36 }
 0x1b0   : > { %1963 = vmatprep.subr.bf16.mxu0 %v1606_v49 }
 0x1b3   : > { %1964 = vmatpush3.bf16.msra.mxu0 %v1606_v49 }
 0x1b6   : > { %1966 = vmatmul.mubr.bf16.vlgmr.msra.gmra.mrb[0].mxu0 %v1615_v1 }
 0x26b   : > { %v1927_v51 = vpop.f32.mrb[0].mxu1 }
 0x26c   : > { %v1534_v29 = vpop.f32.mrb[1].mxu1 }
 0x26d   : > { %v1928_v39 = vpop.f32.mrb[2].mxu1 }
 0x26e   : > { %v1537_v21 = vpop.f32.mrb[3].mxu1 }
 0x289   : > { %v1967_v41 = vpop.f32.mrb[0].mxu0 }
 0x28a   : > { %v1969_v38 = vadd.f32 %v1967_v41, %v1927_v51  ;;  %v1652_v53 = vpop.f32.mrb[1].mxu0 }
 0x28b   : > { %v1970_v15 = vadd.f32 %v1652_v53, %v1534_v29  ;;  %v1968_v54 = vpop.f32.mrb[2].mxu0 }
 0x28c   : > { %v1680_v3 = vadd.f32 %v1969_v38, %v1872_v32  ;;  %v1971_v44 = vadd.f32 %v1968_v54, %v1928_v39  ;;  %v1655_v45 = vpop.f32.mrb[3].mxu0 }
 0x28d   : > { %v1678_v9 = vadd.f32 %v1970_v15, %v1872_v32  ;;  %v1972_v30 = vadd.f32 %v1655_v45, %v1537_v21 }
 0x28e   : > { %1684 = vst [vmem:[%s2766_s23 + $0x10] sm:$0xff] %v1680_v3  ;;  %v1681_v16 = vadd.f32 %v1971_v44, %v1872_v32 }
 0x28f   : > { %1682 = vst [vmem:[%s2766_s23] sm:$0xff] %v1678_v9  ;;  %v1679_v62 = vadd.f32 %v1972_v30, %v1872_v32 }
 0x290   : > { %1685 = vst [vmem:[%s2766_s23 + $0x18] sm:$0xff] %v1681_v16 }
 0x291   : > { %1683 = vst [vmem:[%s2766_s23 + $0x8] sm:$0xff] %v1679_v62 }
 0x292   : > { %2400 = shalt.err (!%p2397_p4)
}
 0x293   : > { %s2401_s23 = scalar_lea.hbm %s3454_s17, 512  ;;  %s2405_s18 = scalar_lea.hbm %s3635_s30, 1024 }
 0x294   : > { %p2402_p2 = scmp.ne.s32.totalorder %s3454_s17, %s2401_s23  ;;  %p2406_p1 = scmp.lt.u32.totalorder %s3454_s17, %s3635_s30 }
 0x295   : > { %p2407_p11 = scmp.lt.u32.totalorder %s2405_s18, %s2401_s23  ;;  %p2409_p6 = scmp.lt.u32.totalorder %s2401_s23, %s3454_s17 }
 0x296   : > { %p2403_p8 = pnand %p2402_p2, %p2688_p10 }
 0x297   : > { %p2408_p13 = por %p2407_p11, %p2406_p1 }
 0x298   : > { %p2404_p12 = pneg %p2403_p8 }
 0x299   : > { %p2410_p3 = por %p2409_p6, %p2408_p13 }
 0x29b   : > { %p2411_p5 = pnand %p2410_p3, %p2404_p12 }
 0x29d   : > { %2414 = shalt.err (!%p2411_p5)
}
 0x29e   : > { %s2486_s20 = smov 128   ;;  %s2487_s22 = smov 8  }
 0x29f   : > { %1994 = dma.vmem_to_hbm [thread:$0]  (%p2688_p10), %s3456_s15, 512, %s3454_s17, %s1687_s27, %s2486_s20, %s2486_s20, %s2487_s22  }
 0x2a0 PF: > { %s3636_s12 = sld [smem:[#allocation17_spill]]  ;;  %s3637_s19 = sld [smem:[#allocation18_spill]] }
 0x2a1   : > { %p3639_p9 = scmp.ge.s32.totalorder %s2477_s29, 2 }
 0x2a6   : > { %s1716_s13 = sand.u32 1, %s3636_s12   ;;  %p3638_p7 = scmp.ne.s32.totalorder %s3637_s19, 0 }
 0x2a7   : > { %s1717_s9 = scalar_lea.sflag [#allocation6], %s1716_s13 }
 0x2a8   : > { %p2011_p0 = pnand %p3639_p9, %p3638_p7 }
 0x2aa   : > { %2452 = dma.done.wait (!%p2011_p0), %s1717_s9, 512  }
 0x2ab   : > { %2454 = vsyncadd (!%p2011_p0), %s1717_s9, 4294966784  ;;  %s25_s29 = sadd.s32 1, %s2477_s29   ;;  %s3640_s24 = smov %s2461_s25 }
 0x2ac   : > { %p22_p4 = scmp.ge.s32.totalorder %s25_s29, 4   ;;  %s3641_s25 = smov %s2465_s26 }
 0x2ad   : > { %s3642_s26 = smov %s2704_s10  ;;  %s3643_s27 = smov %s2473_s28 }
 0x2ae   : > { %s3644_s28 = smov %s3646_s16  ;;  %24 = sbr.rel (!%p22_p4) target bundleno = 11 (0xb), region = 123 }
 0x2b5   :  { %1722 = vsyncpa [#allocation5], 1 }
 0x2b6   :  { %1724 = vsyncpa [#allocation5 + $0x1], 1 }
 0x2b7   :  { %1725 = vsyncpa [#allocation8], 1 }
 0x2b8   :  { %1726 = vsyncpa [#allocation11], 1 }
 0x2b9   :  { %1727 = vsyncpa [#allocation6], 1 }
 0x2ba   :  { %1729 = vsyncpa [#allocation6 + $0x1], 1 }

</bundles_post_ra>
